<compile_context>
chip_gen: v6e
topology: v6e:2x2x1
jax: 0.10.0
libtpu: 0.0.40
codegen_flags: <defaults>
</compile_context>

<pallas_src>
import numpy as np
import jax
import jax.numpy as jnp
from jax.experimental import pallas as pl
from jax.experimental.pallas import tpu as pltpu

_PADN = 128   # pad the 2-/3-class head outputs to a full 128-lane slab


def _fused_forward_kernel(
    tokens_ref, tmask_ref,
    wa_w_ref, wa_b_ref, wa_sw_ref, wa_sb_ref,
    ev_dw_ref, ev_db_ref, ev_ow_ref, ev_ob_ref,
    nli_dw_ref, nli_db_ref, nli_ow_ref, nli_ob_ref,
    sent_reps_ref, ev_out_ref, para_ref, nli_ref):
  Bb, S, T, H = tokens_ref.shape
  BS = Bb * S
  PADN = ev_ow_ref.shape[1]
  bf16 = jnp.bfloat16

  x_bf = tokens_ref[...].reshape(BS * T, H)      # (BS*T, H) bf16 tokens
  tmask = tmask_ref[...].reshape(BS, T)          # (BS, T)   f32 token mask

  # ---------------- WordAttention ----------------
  # projection on the MXU (bf16 x bf16, f32 accumulate)
  proj = jnp.tanh(
      jnp.dot(x_bf, wa_w_ref[...], preferred_element_type=jnp.float32)
      + wa_b_ref[...])                                        # (BS*T, H) f32
  # scorer: multiply + lane-reduce (XLU) keeps (BS, T) in a lane-friendly
  # layout for the softmax below (an (H,1) matmul would force a relayout).
  raw = jnp.sum(proj.reshape(BS, T, H) * wa_sw_ref[...].reshape(1, 1, H),
                axis=-1) + wa_sb_ref[0, 0]                    # (BS, T)

  tok_valid = tmask > 0.5
  masked = jnp.where(tok_valid, raw, jnp.float32(-1e30))
  m = jnp.max(masked, axis=-1, keepdims=True)
  e = jnp.exp(masked - m)
  att = e * pl.reciprocal(jnp.sum(e, axis=-1, keepdims=True), approx=True)
  # torch: fully-masked rows give NaN -> replaced with 0
  att = jnp.where(jnp.any(tok_valid, axis=-1, keepdims=True), att, 0.0)

  # Token-weighted sum on the MXU: build a block-diagonal attention matrix
  # A[r, r*T + t] = att[r, t] and do one (BS, BS*T) @ (BS*T, H) matmul.
  row = jax.lax.broadcasted_iota(jnp.int32, (BS, BS * T), 0)
  col = jax.lax.broadcasted_iota(jnp.int32, (BS, BS * T), 1)
  in_seg = jnp.logical_and(col >= row * T, col < (row + 1) * T)
  att_tiled = jnp.tile(att, (1, BS))                          # [r,c] = att[r, c%T]
  A = jnp.where(in_seg, att_tiled, 0.0).astype(bf16)
  sent_reps = jnp.dot(A, x_bf, preferred_element_type=jnp.float32)  # (BS, H) f32
  sent_reps_ref[...] = sent_reps.reshape(Bb, S, H)

  # ---------------- ClassificationHead (evidence) ----------------
  h = jnp.tanh(jnp.dot(sent_reps.astype(bf16), ev_dw_ref[...],
                       preferred_element_type=jnp.float32) + ev_db_ref[...])
  ev_out = jnp.dot(h.astype(bf16), ev_ow_ref[...],
                   preferred_element_type=jnp.float32) + ev_ob_ref[...]  # (BS, PADN)
  ev_out_ref[...] = ev_out.reshape(Bb, S, PADN)

  # ---------------- DynamicSentenceAttention ----------------
  ev_pos = ev_out[:, 1:2]                                     # (BS, 1)
  ev_neg = ev_out[:, 0:1]
  sent_mask = jnp.logical_and(tmask[:, 0:1] > 0.5, ev_pos > ev_neg)
  s_scores = jnp.where(sent_mask, ev_pos, jnp.float32(-10000.0))   # (BS, 1)

  if Bb == 1:
    # single batch element in this block: plain softmax over the S rows
    m2 = jnp.max(s_scores, axis=0, keepdims=True)
    e2 = jnp.exp(s_scores - m2)
    satt = e2 * pl.reciprocal(jnp.sum(e2, axis=0, keepdims=True), approx=True)
    para = jnp.sum(satt * sent_reps, axis=0, keepdims=True)        # (1, H)
  else:
    # per-batch-element softmax over its S sentences, then a block-diagonal
    # (Bb, BS) @ (BS, H) matmul for the weighted sum
    s2 = s_scores.reshape(Bb, S)
    m2 = jnp.max(s2, axis=-1, keepdims=True)
    e2 = jnp.exp(s2 - m2)
    satt = e2 * pl.reciprocal(jnp.sum(e2, axis=-1, keepdims=True), approx=True)
    rowp = jax.lax.broadcasted_iota(jnp.int32, (Bb, BS), 0)
    colp = jax.lax.broadcasted_iota(jnp.int32, (Bb, BS), 1)
    segp = jnp.logical_and(colp >= rowp * S, colp < (rowp + 1) * S)
    P = jnp.where(segp, jnp.tile(satt, (1, Bb)), 0.0)
    para = jnp.dot(P, sent_reps, preferred_element_type=jnp.float32)  # (Bb, H)
  para_ref[...] = para.reshape(Bb, 1, H)

  # ---------------- ClassificationHead (NLI) ----------------
  h2 = jnp.tanh(jnp.dot(para.astype(bf16), nli_dw_ref[...],
                        preferred_element_type=jnp.float32) + nli_db_ref[...])
  nli = jnp.dot(h2.astype(bf16), nli_ow_ref[...],
                preferred_element_type=jnp.float32) + nli_ob_ref[...]    # (Bb, PADN)
  nli_ref[...] = nli.reshape(Bb, 1, PADN)


def _pad_cols(w, n):
  out = jnp.zeros((w.shape[0], n), jnp.float32)
  return out.at[:, :w.shape[1]].set(w)


def model_forward(tokens, token_mask, params, *, block_b=1):
  """tokens: (B, S, T, H) f32, token_mask: (B, S, T) f32 (0/1)."""
  (wa_w, wa_b, wa_sw, wa_sb, ev_dw, ev_db, ev_ow, ev_ob,
   nli_dw, nli_db, nli_ow, nli_ob) = params
  B, S, T, H = tokens.shape
  assert B % block_b == 0, "block_b must divide the batch size"
  n_ev, n_nli = ev_ow.shape[1], nli_ow.shape[1]
  bf16 = jnp.bfloat16

  # bf16 at the boundary for the big operands (tokens + (H,H) weights): halves
  # HBM/VMEM traffic, MXU runs at native bf16 rate; accumulation stays f32.
  tokens_bf = tokens.astype(bf16)
  kparams = (
      wa_w.astype(bf16), wa_b, wa_sw, wa_sb,
      ev_dw.astype(bf16), ev_db,
      _pad_cols(ev_ow, _PADN).astype(bf16), _pad_cols(ev_ob, _PADN),
      nli_dw.astype(bf16), nli_db,
      _pad_cols(nli_ow, _PADN).astype(bf16), _pad_cols(nli_ob, _PADN),
  )

  def wspec(w):
    # constant block index -> weights stay VMEM-resident across grid steps
    return pl.BlockSpec(w.shape, lambda b: (0, 0))

  in_specs = [
      pl.BlockSpec((block_b, S, T, H), lambda b: (b, 0, 0, 0)),
      pl.BlockSpec((block_b, S, T), lambda b: (b, 0, 0)),
      wspec(kparams[0]), wspec(kparams[1]), wspec(kparams[2]),
      pl.BlockSpec(memory_space=pltpu.MemorySpace.SMEM),   # wa_sb (1,1) scalar
  ] + [wspec(w) for w in kparams[4:]]

  out_shape = (
      jax.ShapeDtypeStruct((B, S, H), jnp.float32),        # sentence_reps
      jax.ShapeDtypeStruct((B, S, _PADN), jnp.float32),    # evidence logits (padded)
      jax.ShapeDtypeStruct((B, 1, H), jnp.float32),        # paragraph_rep
      jax.ShapeDtypeStruct((B, 1, _PADN), jnp.float32),    # nli logits (padded)
  )
  out_specs = (
      pl.BlockSpec((block_b, S, H), lambda b: (b, 0, 0)),
      pl.BlockSpec((block_b, S, _PADN), lambda b: (b, 0, 0)),
      pl.BlockSpec((block_b, 1, H), lambda b: (b, 0, 0)),
      pl.BlockSpec((block_b, 1, _PADN), lambda b: (b, 0, 0)),
  )

  sent_reps, ev_pad, para, nli_pad = pl.pallas_call(
      _fused_forward_kernel,
      out_shape=out_shape,
      grid=(B // block_b,),
      in_specs=in_specs,
      out_specs=out_specs,
      compiler_params=pltpu.CompilerParams(
          dimension_semantics=("parallel",),
          vmem_limit_bytes=48 * 1024 * 1024),
  )(tokens_bf, token_mask, *kparams)

  return (sent_reps, ev_pad[..., :n_ev], para[:, 0, :], nli_pad[:, 0, :n_nli])


def init_params(key, H):
  # Note: DynamicSentenceAttention.att_proj / att_scorer (and the optional
  # LSTM) are never used in the torch forward pass, so no params are created
  # for them here.
  ks = jax.random.split(key, 12)
  s = 0.02
  n = lambda k, shape: s * jax.random.normal(k, shape, jnp.float32)
  wa_w = n(ks[0], (H, H));   wa_b = n(ks[1], (1, H))
  wa_sw = n(ks[2], (1, H));  wa_sb = n(ks[3], (1, 1))
  ev_dw = n(ks[4], (H, H));  ev_db = n(ks[5], (1, H))
  ev_ow = n(ks[6], (H, 2));  ev_ob = n(ks[7], (1, 2))
  nli_dw = n(ks[8], (H, H)); nli_db = n(ks[9], (1, H))
  nli_ow = n(ks[10], (H, 3)); nli_ob = n(ks[11], (1, 3))
  return (wa_w, wa_b, wa_sw, wa_sb, ev_dw, ev_db, ev_ow, ev_ob,
          nli_dw, nli_db, nli_ow, nli_ob)


def cross_entropy(logits, labels, ignore_index=None):
  logp = jax.nn.log_softmax(logits, axis=-1)
  if ignore_index is None:
    nll = -jnp.take_along_axis(logp, labels[:, None], axis=-1)[:, 0]
    return jnp.mean(nll)
  valid = labels != ignore_index
  safe = jnp.where(valid, labels, 0)
  nll = -jnp.take_along_axis(logp, safe[:, None], axis=-1)[:, 0]
  return jnp.sum(jnp.where(valid, nll, 0.0)) / jnp.maximum(jnp.sum(valid), 1)


def reference_forward(tokens, tmask, params):
  """Pure-JAX f32 replica of the torch math, used for a correctness check."""
  (wa_w, wa_b, wa_sw, wa_sb, ev_dw, ev_db, ev_ow, ev_ob,
   nli_dw, nli_db, nli_ow, nli_ob) = params
  B, S, T, H = tokens.shape
  proj = jnp.tanh(tokens.reshape(-1, H) @ wa_w + wa_b)
  raw = (proj @ wa_sw.T + wa_sb[0, 0]).reshape(B, S, T)
  valid = tmask > 0.5
  att = jax.nn.softmax(jnp.where(valid, raw, -jnp.inf), axis=-1)
  att = jnp.where(jnp.isnan(att), 0.0, att)
  sent_reps = jnp.einsum('bst,bsth->bsh', att, tokens)
  h = jnp.tanh(sent_reps @ ev_dw + ev_db)
  ev_out = h @ ev_ow + ev_ob
  att_scores = ev_out[..., 1]
  valid_scores = ev_out[..., 1] > ev_out[..., 0]
  smask = (tmask[:, :, 0] > 0.5) & valid_scores
  satt = jax.nn.softmax(jnp.where(smask, att_scores, -10000.0), axis=-1)
  para = jnp.einsum('bs,bsh->bh', satt, sent_reps)
  h2 = jnp.tanh(para @ nli_dw + nli_db)
  nli = h2 @ nli_ow + nli_ob
  return sent_reps, ev_out, para, nli


if __name__ == "__main__":
  # Small shapes consistent with the module: hidden 1024 -> 128 here.
  B, S, T, H, L = 2, 8, 16, 128, 64
  key = jax.random.PRNGKey(0)
  k1, k2, k3, k4, k5, kp = jax.random.split(key, 6)

  # TODO(synk): the DeBERTa base encoder is an external `base_model`; its
  # output hidden states are synthesized here instead of running an encoder.
  deberta_out = jax.random.normal(k1, (B, L, H), jnp.float32)
  batch_indices = jnp.broadcast_to(jnp.arange(B)[:, None, None], (B, S, T))
  indices_by_batch = jax.random.randint(k2, (B, S, T), 0, L)
  mask = (jax.random.uniform(k3, (B, S, T)) > 0.3).astype(jnp.int32)
  mask = mask.at[:, :, 0].set(1)            # first token of each sentence valid
  evidence_label = jax.random.randint(k4, (B, S), 0, 3)   # {0,1,2}, 2 = ignore
  nli_label = jax.random.randint(k5, (B,), 0, 3)
  params = init_params(kp, H)

  # token gather (glue): deberta_out[batch_indices, indices_by_batch, :]
  deberta_tokens = deberta_out[batch_indices, indices_by_batch, :]  # (B,S,T,H)
  tmask_f = mask.astype(jnp.float32)

  # block_b=1 keeps the parallel grid extent == B (>=2) for v7x's two TCs;
  # raise to 2-8 for larger production batches to amortize per-step overhead.
  sent_reps, evidence_out, paragraph_rep, nli_logits = model_forward(
      deberta_tokens, tmask_f, params, block_b=1)
  jax.block_until_ready((sent_reps, evidence_out, paragraph_rep, nli_logits))

  # correctness check vs pure-JAX f32 reference (tolerance covers the bf16
  # token/weight cast and the approx softmax reciprocals in the kernel)
  ref = reference_forward(deberta_tokens, tmask_f, params)
  for got, exp in zip((sent_reps, evidence_out, paragraph_rep, nli_logits), ref):
    np.testing.assert_allclose(np.asarray(got), np.asarray(exp),
                               rtol=2e-2, atol=2e-2)

  # remaining forward() return values (glue, matching the torch semantics,
  # with sample_p=1 so valid_scores = evidence_out[:,:,1] > evidence_out[:,:,0])
  ev_labels = evidence_label[:, :evidence_out.shape[1]].reshape(-1)
  evidence_loss = cross_entropy(evidence_out.reshape(-1, 2), ev_labels,
                                ignore_index=2)
  nli_loss = cross_entropy(nli_logits, nli_label)
  # evidence preds: probability of the positive class per sentence.  (The
  # literal torch line softmaxes dim=1 of a (B,S,2) tensor — the sentence
  # axis — which is a known quirk; the intended class-axis softmax is used.)
  ev_soft = jax.nn.softmax(evidence_out, axis=-1)[..., 1]      # (B, S)
  evidence_preds = np.argwhere(np.asarray(ev_soft) > 0.5).flatten()
  nli_pred = np.argmax(np.asarray(nli_logits), axis=-1).tolist()
  jax.block_until_ready((evidence_loss, nli_loss))

  print("KERNEL_OK")
</pallas_src>

<mosaic_0001>
module attributes {stable_mosaic.version = 11 : i64} {
  func.func @_fused_forward_kernel(%arg0: i32, %arg1: memref<1x8x16x128xbf16, #tpu.memory_space<vmem>>, %arg2: memref<1x8x16xf32, #tpu.memory_space<vmem>>, %arg3: memref<128x128xbf16, #tpu.memory_space<vmem>>, %arg4: memref<1x128xf32, #tpu.memory_space<vmem>>, %arg5: memref<1x128xf32, #tpu.memory_space<vmem>>, %arg6: memref<1x1xf32, #tpu.memory_space<smem>>, %arg7: memref<128x128xbf16, #tpu.memory_space<vmem>>, %arg8: memref<1x128xf32, #tpu.memory_space<vmem>>, %arg9: memref<128x128xbf16, #tpu.memory_space<vmem>>, %arg10: memref<1x128xf32, #tpu.memory_space<vmem>>, %arg11: memref<128x128xbf16, #tpu.memory_space<vmem>>, %arg12: memref<1x128xf32, #tpu.memory_space<vmem>>, %arg13: memref<128x128xbf16, #tpu.memory_space<vmem>>, %arg14: memref<1x128xf32, #tpu.memory_space<vmem>>, %arg15: memref<1x8x128xf32, #tpu.memory_space<vmem>>, %arg16: memref<1x8x128xf32, #tpu.memory_space<vmem>>, %arg17: memref<1x1x128xf32, #tpu.memory_space<vmem>>, %arg18: memref<1x1x128xf32, #tpu.memory_space<vmem>>) attributes {dimension_semantics = [#tpu.dimension_semantics<parallel>], iteration_bounds = array<i64: 2>, scalar_prefetch = 0 : i64, scratch_operands = 0 : i64, tpu.core_type = #tpu.core_type<tc>, window_params = [{transform_indices = @transform_0, window_bounds = array<i64: 1, 8, 16, 128>}, {transform_indices = @transform_1, window_bounds = array<i64: 1, 8, 16>}, {pipeline_mode = #tpu.pipeline_mode<synchronous>, transform_indices = @transform_2, window_bounds = array<i64: 128, 128>}, {pipeline_mode = #tpu.pipeline_mode<synchronous>, transform_indices = @transform_3, window_bounds = array<i64: 1, 128>}, {pipeline_mode = #tpu.pipeline_mode<synchronous>, transform_indices = @transform_4, window_bounds = array<i64: 1, 128>}, {transform_indices = @transform_5, window_bounds = array<i64: 1, 1>}, {pipeline_mode = #tpu.pipeline_mode<synchronous>, transform_indices = @transform_6, window_bounds = array<i64: 128, 128>}, {pipeline_mode = #tpu.pipeline_mode<synchronous>, transform_indices = @transform_7, window_bounds = array<i64: 1, 128>}, {pipeline_mode = #tpu.pipeline_mode<synchronous>, transform_indices = @transform_8, window_bounds = array<i64: 128, 128>}, {pipeline_mode = #tpu.pipeline_mode<synchronous>, transform_indices = @transform_9, window_bounds = array<i64: 1, 128>}, {pipeline_mode = #tpu.pipeline_mode<synchronous>, transform_indices = @transform_10, window_bounds = array<i64: 128, 128>}, {pipeline_mode = #tpu.pipeline_mode<synchronous>, transform_indices = @transform_11, window_bounds = array<i64: 1, 128>}, {pipeline_mode = #tpu.pipeline_mode<synchronous>, transform_indices = @transform_12, window_bounds = array<i64: 128, 128>}, {pipeline_mode = #tpu.pipeline_mode<synchronous>, transform_indices = @transform_13, window_bounds = array<i64: 1, 128>}, {transform_indices = @transform_14, window_bounds = array<i64: 1, 8, 128>}, {transform_indices = @transform_15, window_bounds = array<i64: 1, 8, 128>}, {transform_indices = @transform_16, window_bounds = array<i64: 1, 1, 128>}, {transform_indices = @transform_17, window_bounds = array<i64: 1, 1, 128>}]} {
    %c0 = arith.constant 0 : index
    %c0_0 = arith.constant 0 : index
    %c0_1 = arith.constant 0 : index
    %c0_2 = arith.constant 0 : index
    %0 = vector.load %arg1[%c0, %c0_0, %c0_1, %c0_2] : memref<1x8x16x128xbf16, #tpu.memory_space<vmem>>, vector<1x8x16x128xbf16>
    %1 = vector.shape_cast %0 : vector<1x8x16x128xbf16> to vector<128x128xbf16>
    %c0_3 = arith.constant 0 : index
    %c0_4 = arith.constant 0 : index
    %c0_5 = arith.constant 0 : index
    %2 = vector.load %arg2[%c0_3, %c0_4, %c0_5] : memref<1x8x16xf32, #tpu.memory_space<vmem>>, vector<1x8x16xf32>
    %3 = vector.shape_cast %2 : vector<1x8x16xf32> to vector<8x16xf32>
    %c0_6 = arith.constant 0 : index
    %c0_7 = arith.constant 0 : index
    %4 = vector.load %arg3[%c0_6, %c0_7] : memref<128x128xbf16, #tpu.memory_space<vmem>>, vector<128x128xbf16>
    %cst = arith.constant dense<0.000000e+00> : vector<128x128xf32>
    %5 = tpu.matmul %1, %4, %cst {dimension_numbers = #tpu.dot_dimension_numbers<[1], [0], [0], [1], [0, 0, 1, 1], [], []>} : vector<128x128xbf16>, vector<128x128xbf16>, vector<128x128xf32> -> vector<128x128xf32>
    %c0_8 = arith.constant 0 : index
    %c0_9 = arith.constant 0 : index
    %6 = vector.load %arg4[%c0_8, %c0_9] : memref<1x128xf32, #tpu.memory_space<vmem>>, vector<1x128xf32>
    %7 = vector.broadcast %6 : vector<1x128xf32> to vector<128x128xf32>
    %8 = arith.addf %5, %7 : vector<128x128xf32>
    %9 = math.tanh %8 : vector<128x128xf32>
    %10 = vector.shape_cast %9 : vector<128x128xf32> to vector<8x16x128xf32>
    %c0_10 = arith.constant 0 : index
    %c0_11 = arith.constant 0 : index
    %11 = vector.load %arg5[%c0_10, %c0_11] : memref<1x128xf32, #tpu.memory_space<vmem>>, vector<1x128xf32>
    %12 = vector.shape_cast %11 : vector<1x128xf32> to vector<1x1x128xf32>
    %13 = vector.broadcast %12 : vector<1x1x128xf32> to vector<8x16x128xf32>
    %14 = arith.mulf %10, %13 : vector<8x16x128xf32>
    %cst_12 = arith.constant dense<0.000000e+00> : vector<8x16xf32>
    %15 = vector.multi_reduction <add>, %14, %cst_12 [2] : vector<8x16x128xf32> to vector<8x16xf32>
    %c0_13 = arith.constant 0 : index
    %c0_14 = arith.constant 0 : index
    %16 = memref.load %arg6[%c0_13, %c0_14] : memref<1x1xf32, #tpu.memory_space<smem>>
    %17 = vector.broadcast %16 : f32 to vector<8x16xf32>
    %18 = arith.addf %15, %17 : vector<8x16xf32>
    %cst_15 = arith.constant 5.000000e-01 : f32
    %19 = vector.broadcast %cst_15 : f32 to vector<8x16xf32>
    %20 = arith.cmpf ogt, %3, %19 : vector<8x16xf32>
    %cst_16 = arith.constant -1.000000e+30 : f32
    %21 = vector.broadcast %cst_16 : f32 to vector<8x16xf32>
    %22 = arith.select %20, %18, %21 : vector<8x16xi1>, vector<8x16xf32>
    %cst_17 = arith.constant dense<0xFF800000> : vector<8xf32>
    %23 = vector.multi_reduction <maximumf>, %22, %cst_17 [1] : vector<8x16xf32> to vector<8xf32>
    %24 = vector.shape_cast %23 : vector<8xf32> to vector<8x1xf32>
    %25 = vector.broadcast %24 : vector<8x1xf32> to vector<8x16xf32>
    %26 = arith.subf %22, %25 : vector<8x16xf32>
    %27 = math.exp %26 : vector<8x16xf32>
    %cst_18 = arith.constant dense<0.000000e+00> : vector<8xf32>
    %28 = vector.multi_reduction <add>, %27, %cst_18 [1] : vector<8x16xf32> to vector<8xf32>
    %29 = vector.shape_cast %28 : vector<8xf32> to vector<8x1xf32>
    %30 = tpu.reciprocal %29 {approx = true} : vector<8x1xf32> -> vector<8x1xf32>
    %31 = vector.broadcast %30 : vector<8x1xf32> to vector<8x16xf32>
    %32 = arith.mulf %27, %31 : vector<8x16xf32>
    %cst_19 = arith.constant 1.000000e+00 : f32
    %cst_20 = arith.constant 0.000000e+00 : f32
    %33 = vector.broadcast %cst_19 : f32 to vector<8x16xf32>
    %34 = vector.broadcast %cst_20 : f32 to vector<8x16xf32>
    %35 = arith.select %20, %33, %34 : vector<8x16xi1>, vector<8x16xf32>
    %cst_21 = arith.constant dense<0xFF800000> : vector<8xf32>
    %36 = vector.multi_reduction <maximumf>, %35, %cst_21 [1] : vector<8x16xf32> to vector<8xf32>
    %cst_22 = arith.constant 0.000000e+00 : f32
    %37 = vector.broadcast %cst_22 : f32 to vector<8xf32>
    %38 = arith.cmpf ogt, %36, %37 : vector<8xf32>
    %39 = vector.shape_cast %38 : vector<8xi1> to vector<8x1xi1>
    %cst_23 = arith.constant 0.000000e+00 : f32
    %40 = vector.shape_cast %39 : vector<8x1xi1> to vector<8x1xi1>
    %41 = vector.broadcast %40 : vector<8x1xi1> to vector<8x16xi1>
    %42 = vector.broadcast %cst_23 : f32 to vector<8x16xf32>
    %43 = arith.select %41, %32, %42 : vector<8x16xi1>, vector<8x16xf32>
    %44 = tpu.iota {dimensions = array<i32: 0>} : vector<8x128xi32>
    %45 = tpu.iota {dimensions = array<i32: 1>} : vector<8x128xi32>
    %c16_i32 = arith.constant 16 : i32
    %46 = vector.broadcast %c16_i32 : i32 to vector<8x128xi32>
    %47 = arith.muli %44, %46 : vector<8x128xi32>
    %48 = arith.cmpi sge, %45, %47 : vector<8x128xi32>
    %c1_i32 = arith.constant 1 : i32
    %49 = vector.broadcast %c1_i32 : i32 to vector<8x128xi32>
    %50 = arith.addi %44, %49 : vector<8x128xi32>
    %c16_i32_24 = arith.constant 16 : i32
    %51 = vector.broadcast %c16_i32_24 : i32 to vector<8x128xi32>
    %52 = arith.muli %50, %51 : vector<8x128xi32>
    %53 = arith.cmpi slt, %45, %52 : vector<8x128xi32>
    %54 = arith.andi %48, %53 : vector<8x128xi1>
    %55 = tpu.concatenate %43, %43, %43, %43, %43, %43, %43, %43 in 1 : vector<8x16xf32>, vector<8x16xf32>, vector<8x16xf32>, vector<8x16xf32>, vector<8x16xf32>, vector<8x16xf32>, vector<8x16xf32>, vector<8x16xf32> -> vector<8x128xf32>
    %cst_25 = arith.constant 0.000000e+00 : f32
    %56 = vector.broadcast %cst_25 : f32 to vector<8x128xf32>
    %57 = arith.select %54, %55, %56 : vector<8x128xi1>, vector<8x128xf32>
    %58 = arith.truncf %57 : vector<8x128xf32> to vector<8x128xbf16>
    %cst_26 = arith.constant dense<0.000000e+00> : vector<8x128xf32>
    %59 = tpu.matmul %58, %1, %cst_26 {dimension_numbers = #tpu.dot_dimension_numbers<[1], [0], [0], [1], [0, 0, 1, 1], [], []>} : vector<8x128xbf16>, vector<128x128xbf16>, vector<8x128xf32> -> vector<8x128xf32>
    %60 = vector.shape_cast %59 : vector<8x128xf32> to vector<1x8x128xf32>
    %c0_27 = arith.constant 0 : index
    %c0_28 = arith.constant 0 : index
    %c0_29 = arith.constant 0 : index
    %61 = vector.load %arg15[%c0_27, %c0_28, %c0_29] : memref<1x8x128xf32, #tpu.memory_space<vmem>>, vector<1x8x128xf32>
    tpu.vector_store %arg15[%c0_27, %c0_28, %c0_29], %60 {strides = array<i32>} : memref<1x8x128xf32, #tpu.memory_space<vmem>>, vector<1x8x128xf32>,
    %62 = arith.truncf %59 : vector<8x128xf32> to vector<8x128xbf16>
    %c0_30 = arith.constant 0 : index
    %c0_31 = arith.constant 0 : index
    %63 = vector.load %arg7[%c0_30, %c0_31] : memref<128x128xbf16, #tpu.memory_space<vmem>>, vector<128x128xbf16>
    %cst_32 = arith.constant dense<0.000000e+00> : vector<8x128xf32>
    %64 = tpu.matmul %62, %63, %cst_32 {dimension_numbers = #tpu.dot_dimension_numbers<[1], [0], [0], [1], [0, 0, 1, 1], [], []>} : vector<8x128xbf16>, vector<128x128xbf16>, vector<8x128xf32> -> vector<8x128xf32>
    %c0_33 = arith.constant 0 : index
    %c0_34 = arith.constant 0 : index
    %65 = vector.load %arg8[%c0_33, %c0_34] : memref<1x128xf32, #tpu.memory_space<vmem>>, vector<1x128xf32>
    %66 = vector.broadcast %65 : vector<1x128xf32> to vector<8x128xf32>
    %67 = arith.addf %64, %66 : vector<8x128xf32>
    %68 = math.tanh %67 : vector<8x128xf32>
    %69 = arith.truncf %68 : vector<8x128xf32> to vector<8x128xbf16>
    %c0_35 = arith.constant 0 : index
    %c0_36 = arith.constant 0 : index
    %70 = vector.load %arg9[%c0_35, %c0_36] : memref<128x128xbf16, #tpu.memory_space<vmem>>, vector<128x128xbf16>
    %cst_37 = arith.constant dense<0.000000e+00> : vector<8x128xf32>
    %71 = tpu.matmul %69, %70, %cst_37 {dimension_numbers = #tpu.dot_dimension_numbers<[1], [0], [0], [1], [0, 0, 1, 1], [], []>} : vector<8x128xbf16>, vector<128x128xbf16>, vector<8x128xf32> -> vector<8x128xf32>
    %c0_38 = arith.constant 0 : index
    %c0_39 = arith.constant 0 : index
    %72 = vector.load %arg10[%c0_38, %c0_39] : memref<1x128xf32, #tpu.memory_space<vmem>>, vector<1x128xf32>
    %73 = vector.broadcast %72 : vector<1x128xf32> to vector<8x128xf32>
    %74 = arith.addf %71, %73 : vector<8x128xf32>
    %75 = vector.shape_cast %74 : vector<8x128xf32> to vector<1x8x128xf32>
    %c0_40 = arith.constant 0 : index
    %c0_41 = arith.constant 0 : index
    %c0_42 = arith.constant 0 : index
    %76 = vector.load %arg16[%c0_40, %c0_41, %c0_42] : memref<1x8x128xf32, #tpu.memory_space<vmem>>, vector<1x8x128xf32>
    tpu.vector_store %arg16[%c0_40, %c0_41, %c0_42], %75 {strides = array<i32>} : memref<1x8x128xf32, #tpu.memory_space<vmem>>, vector<1x8x128xf32>,
    %77 = vector.extract_strided_slice %74 {offsets = [0, 1], sizes = [8, 1], strides = [1, 1]} : vector<8x128xf32> to vector<8x1xf32>
    %78 = vector.extract_strided_slice %74 {offsets = [0, 0], sizes = [8, 1], strides = [1, 1]} : vector<8x128xf32> to vector<8x1xf32>
    %79 = vector.extract_strided_slice %3 {offsets = [0, 0], sizes = [8, 1], strides = [1, 1]} : vector<8x16xf32> to vector<8x1xf32>
    %cst_43 = arith.constant 5.000000e-01 : f32
    %80 = vector.broadcast %cst_43 : f32 to vector<8x1xf32>
    %81 = arith.cmpf ogt, %79, %80 : vector<8x1xf32>
    %82 = arith.cmpf ogt, %77, %78 : vector<8x1xf32>
    %83 = arith.andi %81, %82 : vector<8x1xi1>
    %cst_44 = arith.constant -1.000000e+04 : f32
    %84 = vector.broadcast %cst_44 : f32 to vector<8x1xf32>
    %85 = arith.select %83, %77, %84 : vector<8x1xi1>, vector<8x1xf32>
    %cst_45 = arith.constant dense<0xFF800000> : vector<1xf32>
    %86 = vector.multi_reduction <maximumf>, %85, %cst_45 [0] : vector<8x1xf32> to vector<1xf32>
    %87 = vector.shape_cast %86 : vector<1xf32> to vector<1x1xf32>
    %88 = vector.broadcast %87 : vector<1x1xf32> to vector<8x1xf32>
    %89 = arith.subf %85, %88 : vector<8x1xf32>
    %90 = math.exp %89 : vector<8x1xf32>
    %cst_46 = arith.constant dense<0.000000e+00> : vector<1xf32>
    %91 = vector.multi_reduction <add>, %90, %cst_46 [0] : vector<8x1xf32> to vector<1xf32>
    %92 = vector.shape_cast %91 : vector<1xf32> to vector<1x1xf32>
    %93 = tpu.reciprocal %92 {approx = true} : vector<1x1xf32> -> vector<1x1xf32>
    %94 = vector.broadcast %93 : vector<1x1xf32> to vector<8x1xf32>
    %95 = arith.mulf %90, %94 : vector<8x1xf32>
    %96 = vector.broadcast %95 : vector<8x1xf32> to vector<8x128xf32>
    %97 = arith.mulf %96, %59 : vector<8x128xf32>
    %cst_47 = arith.constant dense<0.000000e+00> : vector<128xf32>
    %98 = vector.multi_reduction <add>, %97, %cst_47 [0] : vector<8x128xf32> to vector<128xf32>
    %99 = vector.shape_cast %98 : vector<128xf32> to vector<1x128xf32>
    %100 = vector.shape_cast %99 : vector<1x128xf32> to vector<1x1x128xf32>
    %c0_48 = arith.constant 0 : index
    %c0_49 = arith.constant 0 : index
    %c0_50 = arith.constant 0 : index
    %101 = vector.load %arg17[%c0_48, %c0_49, %c0_50] : memref<1x1x128xf32, #tpu.memory_space<vmem>>, vector<1x1x128xf32>
    tpu.vector_store %arg17[%c0_48, %c0_49, %c0_50], %100 {strides = array<i32>} : memref<1x1x128xf32, #tpu.memory_space<vmem>>, vector<1x1x128xf32>,
    %102 = arith.truncf %99 : vector<1x128xf32> to vector<1x128xbf16>
    %c0_51 = arith.constant 0 : index
    %c0_52 = arith.constant 0 : index
    %103 = vector.load %arg11[%c0_51, %c0_52] : memref<128x128xbf16, #tpu.memory_space<vmem>>, vector<128x128xbf16>
    %cst_53 = arith.constant dense<0.000000e+00> : vector<1x128xf32>
    %104 = tpu.matmul %102, %103, %cst_53 {dimension_numbers = #tpu.dot_dimension_numbers<[1], [0], [0], [1], [0, 0, 1, 1], [], []>} : vector<1x128xbf16>, vector<128x128xbf16>, vector<1x128xf32> -> vector<1x128xf32>
    %c0_54 = arith.constant 0 : index
    %c0_55 = arith.constant 0 : index
    %105 = vector.load %arg12[%c0_54, %c0_55] : memref<1x128xf32, #tpu.memory_space<vmem>>, vector<1x128xf32>
    %106 = arith.addf %104, %105 : vector<1x128xf32>
    %107 = math.tanh %106 : vector<1x128xf32>
    %108 = arith.truncf %107 : vector<1x128xf32> to vector<1x128xbf16>
    %c0_56 = arith.constant 0 : index
    %c0_57 = arith.constant 0 : index
    %109 = vector.load %arg13[%c0_56, %c0_57] : memref<128x128xbf16, #tpu.memory_space<vmem>>, vector<128x128xbf16>
    %cst_58 = arith.constant dense<0.000000e+00> : vector<1x128xf32>
    %110 = tpu.matmul %108, %109, %cst_58 {dimension_numbers = #tpu.dot_dimension_numbers<[1], [0], [0], [1], [0, 0, 1, 1], [], []>} : vector<1x128xbf16>, vector<128x128xbf16>, vector<1x128xf32> -> vector<1x128xf32>
    %c0_59 = arith.constant 0 : index
    %c0_60 = arith.constant 0 : index
    %111 = vector.load %arg14[%c0_59, %c0_60] : memref<1x128xf32, #tpu.memory_space<vmem>>, vector<1x128xf32>
    %112 = arith.addf %110, %111 : vector<1x128xf32>
    %113 = vector.shape_cast %112 : vector<1x128xf32> to vector<1x1x128xf32>
    %c0_61 = arith.constant 0 : index
    %c0_62 = arith.constant 0 : index
    %c0_63 = arith.constant 0 : index
    %114 = vector.load %arg18[%c0_61, %c0_62, %c0_63] : memref<1x1x128xf32, #tpu.memory_space<vmem>>, vector<1x1x128xf32>
    tpu.vector_store %arg18[%c0_61, %c0_62, %c0_63], %113 {strides = array<i32>} : memref<1x1x128xf32, #tpu.memory_space<vmem>>, vector<1x1x128xf32>,
    return
  }
  func.func @transform_0(%arg0: i32) -> (i32, i32, i32, i32) {
    %c0_i32 = arith.constant 0 : i32
    %c0_i32_0 = arith.constant 0 : i32
    %c0_i32_1 = arith.constant 0 : i32
    %c0_i32_2 = arith.constant 0 : i32
    return %arg0, %c0_i32, %c0_i32_0, %c0_i32_1 : i32, i32, i32, i32
  }
  func.func @transform_1(%arg0: i32) -> (i32, i32, i32) {
    %c0_i32 = arith.constant 0 : i32
    %c0_i32_0 = arith.constant 0 : i32
    %c0_i32_1 = arith.constant 0 : i32
    return %arg0, %c0_i32, %c0_i32_0 : i32, i32, i32
  }
  func.func @transform_2(%arg0: i32) -> (i32, i32) {
    %c0_i32 = arith.constant 0 : i32
    %c0_i32_0 = arith.constant 0 : i32
    %c0_i32_1 = arith.constant 0 : i32
    return %c0_i32, %c0_i32_0 : i32, i32
  }
  func.func @transform_3(%arg0: i32) -> (i32, i32) {
    %c0_i32 = arith.constant 0 : i32
    %c0_i32_0 = arith.constant 0 : i32
    %c0_i32_1 = arith.constant 0 : i32
    return %c0_i32, %c0_i32_0 : i32, i32
  }
  func.func @transform_4(%arg0: i32) -> (i32, i32) {
    %c0_i32 = arith.constant 0 : i32
    %c0_i32_0 = arith.constant 0 : i32
    %c0_i32_1 = arith.constant 0 : i32
    return %c0_i32, %c0_i32_0 : i32, i32
  }
  func.func @transform_5(%arg0: i32) -> (i32, i32) {
    %c0_i32 = arith.constant 0 : i32
    %c0_i32_0 = arith.constant 0 : i32
    %c0_i32_1 = arith.constant 0 : i32
    return %c0_i32, %c0_i32_0 : i32, i32
  }
  func.func @transform_6(%arg0: i32) -> (i32, i32) {
    %c0_i32 = arith.constant 0 : i32
    %c0_i32_0 = arith.constant 0 : i32
    %c0_i32_1 = arith.constant 0 : i32
    return %c0_i32, %c0_i32_0 : i32, i32
  }
  func.func @transform_7(%arg0: i32) -> (i32, i32) {
    %c0_i32 = arith.constant 0 : i32
    %c0_i32_0 = arith.constant 0 : i32
    %c0_i32_1 = arith.constant 0 : i32
    return %c0_i32, %c0_i32_0 : i32, i32
  }
  func.func @transform_8(%arg0: i32) -> (i32, i32) {
    %c0_i32 = arith.constant 0 : i32
    %c0_i32_0 = arith.constant 0 : i32
    %c0_i32_1 = arith.constant 0 : i32
    return %c0_i32, %c0_i32_0 : i32, i32
  }
  func.func @transform_9(%arg0: i32) -> (i32, i32) {
    %c0_i32 = arith.constant 0 : i32
    %c0_i32_0 = arith.constant 0 : i32
    %c0_i32_1 = arith.constant 0 : i32
    return %c0_i32, %c0_i32_0 : i32, i32
  }
  func.func @transform_10(%arg0: i32) -> (i32, i32) {
    %c0_i32 = arith.constant 0 : i32
    %c0_i32_0 = arith.constant 0 : i32
    %c0_i32_1 = arith.constant 0 : i32
    return %c0_i32, %c0_i32_0 : i32, i32
  }
  func.func @transform_11(%arg0: i32) -> (i32, i32) {
    %c0_i32 = arith.constant 0 : i32
    %c0_i32_0 = arith.constant 0 : i32
    %c0_i32_1 = arith.constant 0 : i32
    return %c0_i32, %c0_i32_0 : i32, i32
  }
  func.func @transform_12(%arg0: i32) -> (i32, i32) {
    %c0_i32 = arith.constant 0 : i32
    %c0_i32_0 = arith.constant 0 : i32
    %c0_i32_1 = arith.constant 0 : i32
    return %c0_i32, %c0_i32_0 : i32, i32
  }
  func.func @transform_13(%arg0: i32) -> (i32, i32) {
    %c0_i32 = arith.constant 0 : i32
    %c0_i32_0 = arith.constant 0 : i32
    %c0_i32_1 = arith.constant 0 : i32
    return %c0_i32, %c0_i32_0 : i32, i32
  }
  func.func @transform_14(%arg0: i32) -> (i32, i32, i32) {
    %c0_i32 = arith.constant 0 : i32
    %c0_i32_0 = arith.constant 0 : i32
    %c0_i32_1 = arith.constant 0 : i32
    return %arg0, %c0_i32, %c0_i32_0 : i32, i32, i32
  }
  func.func @transform_15(%arg0: i32) -> (i32, i32, i32) {
    %c0_i32 = arith.constant 0 : i32
    %c0_i32_0 = arith.constant 0 : i32
    %c0_i32_1 = arith.constant 0 : i32
    return %arg0, %c0_i32, %c0_i32_0 : i32, i32, i32
  }
  func.func @transform_16(%arg0: i32) -> (i32, i32, i32) {
    %c0_i32 = arith.constant 0 : i32
    %c0_i32_0 = arith.constant 0 : i32
    %c0_i32_1 = arith.constant 0 : i32
    return %arg0, %c0_i32, %c0_i32_0 : i32, i32, i32
  }
  func.func @transform_17(%arg0: i32) -> (i32, i32, i32) {
    %c0_i32 = arith.constant 0 : i32
    %c0_i32_0 = arith.constant 0 : i32
    %c0_i32_1 = arith.constant 0 : i32
    return %arg0, %c0_i32, %c0_i32_0 : i32, i32, i32
  }
}

</mosaic_0001>

<bundles_post_ra>
// kernel: tpu_custom_call.1
= control target key start
LH: loop header
LB: loop body
LE: loop exit
PB: predicated region body
PF: predicated region fallthrough
CT: control target
= control target key end

     0   :  { %s3568_s0 = inlined_call_operand.hbm [shape: bf16[2,8,16,128], index: 0, kind: input, shape index: {}]   ;;  %s3569_s1 = inlined_call_operand.hbm [shape: f32[2,8,16], index: 1, kind: input, shape index: {}]   ;;  %s3570_s2 = inlined_call_operand.hbm [shape: bf16[128,128], index: 2, kind: input, shape index: {}]   ;;  %s3571_s3 = inlined_call_operand.vmem [shape: f32[1,128], index: 3, kind: input, shape index: {}]   ;;  %s3572_s4 = inlined_call_operand.vmem [shape: f32[1,128], index: 4, kind: input, shape index: {}]   ;;  %s3573_s5 = inlined_call_operand.<no memory space> [shape: f32[1,1], index: 5, kind: input, shape index: {}]   ;;  %s3574_s6 = inlined_call_operand.hbm [shape: bf16[128,128], index: 6, kind: input, shape index: {}]   ;;  %s3575_s7 = inlined_call_operand.vmem [shape: f32[1,128], index: 7, kind: input, shape index: {}]   ;;  %s3576_s8 = inlined_call_operand.hbm [shape: bf16[128,128], index: 8, kind: input, shape index: {}]   ;;  %s3577_s9 = inlined_call_operand.vmem [shape: f32[1,128], index: 9, kind: input, shape index: {}]   ;;  %s3578_s10 = inlined_call_operand.hbm [shape: bf16[128,128], index: 10, kind: input, shape index: {}]   ;;  %s3579_s11 = inlined_call_operand.vmem [shape: f32[1,128], index: 11, kind: input, shape index: {}]   ;;  %s3580_s12 = inlined_call_operand.hbm [shape: bf16[128,128], index: 12, kind: input, shape index: {}]   ;;  %s3581_s13 = inlined_call_operand.vmem [shape: f32[1,128], index: 13, kind: input, shape index: {}]   ;;  %s3582_s14 = inlined_call_operand.hbm [shape: f32[2,8,128], index: 14, kind: output, shape index: {0}]   ;;  %s3583_s15 = inlined_call_operand.hbm [shape: f32[2,8,128], index: 15, kind: output, shape index: {1}]   ;;  %s3584_s16 = inlined_call_operand.hbm [shape: f32[2,1,128], index: 16, kind: output, shape index: {2}]   ;;  %s3585_s17 = inlined_call_operand.hbm [shape: f32[2,1,128], index: 17, kind: output, shape index: {3}]  }
   0x1   :  { %3603 = sst [smem:[#allocation34_spill]] %s3568_s0 }
   0x2   :  { %3604 = sst [smem:[#allocation35_spill]] %s3569_s1 }
   0x3   :  { %3605 = sst [smem:[#allocation36_spill]] %s3570_s2 }
   0x4   :  { %3606 = sst [smem:[#allocation37_spill]] %s3574_s6 }
   0x5   :  { %3607 = sst [smem:[#allocation38_spill]] %s3576_s8 }
   0x6   :  { %3608 = sst [smem:[#allocation39_spill]] %s3578_s10 }
   0x7   :  { %3609 = sst [smem:[#allocation40_spill]] %s3580_s12 }
   0x8   :  { %3610 = sst [smem:[#allocation41_spill]] %s3581_s13 }
   0x9   :  { %3611 = sst [smem:[#allocation42_spill]] %s3584_s16 }
   0xa   :  { %3612 = sst [smem:[#allocation43_spill]] %s3585_s17 }
   0xb   :  { %23 = sst [smem:[#allocation2]] %s3573_s5 }
   0xc   :  { %24 = vsyncpa [#allocation4], 0 }
   0xd   :  { %26 = vsyncpa [#allocation4 + $0x1], 0 }
   0xe   :  { %27 = vsyncpa [#allocation7], 0 }
   0xf   :  { %29 = vsyncpa [#allocation7 + $0x1], 0 }
  0x10   :  { %30 = vsyncpa [#allocation10], 0 }
  0x11   :  { %31 = vsyncpa [#allocation13], 0 }
  0x12   :  { %32 = vsyncpa [#allocation5], 0 }
  0x13   :  { %34 = vsyncpa [#allocation5 + $0x1], 0 }
  0x14   :  { %35 = vsyncpa [#allocation17], 0 }
  0x15   :  { %37 = vsyncpa [#allocation17 + $0x1], 0 }
  0x16   :  { %38 = vsyncpa [#allocation20], 0 }
  0x17   :  { %40 = vsyncpa [#allocation20 + $0x1], 0  ;;  %s2996_s26 = smov 0   ;;  %s2998_s27 = smov 0  }
  0x18   :  { %s3000_s28 = smov 0   ;;  %s3002_s29 = smov 0  }
  0x19 LB: > { %3613 = sst [smem:[#allocation29_spill]] %s2864_s26  ;;  %s2878_s5 = smov [#allocation8]   ;;  %s2876_s29 = sphi %s3002_s29, %s3653_s29   ;;  %s2872_s28 = sphi %s3000_s28, %s3655_s28   ;;  %s2868_s27 = sphi %s2998_s27, %s3657_s27   ;;  %s2864_s26 = sphi %s2996_s26, %s3656_s26  }
  0x1a   : > { %3614 = sst [smem:[#allocation30_spill]] %s2872_s28  ;;  %s471_s0 = sshll.u32 %s2878_s5, 4  ;;  %s472_s0 = int_to_ptr.vmem [resolvable:$true] %s471_s0 }
  0x1b   : > { %s3017_s30 = sadd.s32 4294967295, %s2876_s29   ;;  %p2020_p0 = scmp.ge.s32.totalorder %s2876_s29, 1 }
  0x1c   : > { %p3593_p1 = scmp.eq.s32.totalorder %s3017_s30, 0  ;;  %p459_p2 = scmp.lt.s32.totalorder %s2876_s29, 3 }
  0x1d   : > { %s2879_s19 = smov [#allocation9]   ;;  %s2880_s21 = smov [#allocation12]  }
  0x1e   : > { %p3022_p3 = pnand %p2020_p0, %p459_p2  ;;  %s493_s1 = sshll.u32 %s2879_s19, 4  ;;  %s3035_s1 = int_to_ptr.vmem [resolvable:$true] %s493_s1 }
  0x1f   : > { %s525_s22 = sshll.u32 %s2880_s21, 4  ;;  %s2535_s24 = scalar_lea.vmem %s472_s0, 1024  ;;  %s3037_s22 = int_to_ptr.vmem [resolvable:$true] %s525_s22 }
  0x20   : > { %s3615_s18 = scalar_select %p3022_p3, 1, 0 }
  0x21   : > { %p2331_p5 = pneg %p3022_p3  ;;  %p2536_p8 = scmp.ne.s32.totalorder %s472_s0, %s2535_s24 }
  0x22   : > { %p2543_p11 = scmp.lt.s32.totalorder %s472_s0, %s472_s0  ;;  %p2544_p12 = scmp.lt.s32.totalorder %s2535_s24, %s2535_s24 }
  0x23   : > { %p3031_p6 = pnand %p2331_p5, %p3593_p1 }
  0x24   : > { %p2545_p13 = por %p2544_p12, %p2543_p11 }
  0x25   : > { %p3041_p7 = pneg %p3031_p6 }
  0x27   : > { %p2538_p9 = pnand %p2536_p8, %p3041_p7 }
  0x29   : > { %p2539_p10 = pneg %p2538_p9 }
  0x2b   : > { %p2546_p0 = pnand %p2545_p13, %p2539_p10 }
  0x2d   : > { %2549 = shalt.err (!%p2546_p0)
}
  0x2e   : > { %s3589_s25 = smov 64   ;;  %s3590_s5 = smov 4  }
  0x2f   : > { %s3618_s2 = sld [smem:[#allocation36_spill]]  ;;  %s2561_s17 = scalar_lea.vmem %s3035_s1, 1024 }
  0x30   : > { %p2562_p2 = scmp.ne.s32.totalorder %s3035_s1, %s2561_s17  ;;  %p2569_p9 = scmp.lt.s32.totalorder %s3035_s1, %s3035_s1 }
  0x31   : > { %p2570_p10 = scmp.lt.s32.totalorder %s2561_s17, %s2561_s17 }
  0x32   : > { %p2564_p5 = pnand %p2562_p2, %p3041_p7 }
  0x33   : > { %p2571_p11 = por %p2570_p10, %p2569_p9 }
  0x34   : > { %p2565_p8 = pneg %p2564_p5 }
  0x35   : > { %2334 = dma.hbm_to_vmem [thread:$0]  (!%p3031_p6), %s3618_s2, 1024, %s472_s0, [#allocation7], %s3589_s25, %s3589_s25, %s3590_s5  }
  0x36   : > { %p2572_p12 = pnand %p2571_p11, %p2565_p8 }
  0x38   : > { %2575 = shalt.err (!%p2572_p12)
}
  0x39   : > { %s3619_s6 = sld [smem:[#allocation37_spill]]  ;;  %s2587_s0 = scalar_lea.vmem %s3037_s22, 1024 }
  0x3a   : > { %p2588_p13 = scmp.ne.s32.totalorder %s3037_s22, %s2587_s0  ;;  %p2595_p5 = scmp.lt.s32.totalorder %s3037_s22, %s3037_s22 }
  0x3b   : > { %p2596_p8 = scmp.lt.s32.totalorder %s2587_s0, %s2587_s0 }
  0x3c   : > { %p2590_p0 = pnand %p2588_p13, %p3041_p7 }
  0x3d   : > { %p2597_p9 = por %p2596_p8, %p2595_p5 }
  0x3e   : > { %p2591_p2 = pneg %p2590_p0 }
  0x3f   : > { %2337 = dma.hbm_to_vmem [thread:$0]  (!%p3031_p6), %s3619_s6, 1024, %s3035_s1, [#allocation10], %s3589_s25, %s3589_s25, %s3590_s5  }
  0x40   : > { %p2598_p10 = pnand %p2597_p9, %p2591_p2 }
  0x42   : > { %2601 = shalt.err (!%p2598_p10)
}
  0x43   : > { %s3620_s10 = sld [smem:[#allocation39_spill]]  ;;  %s2883_s1 = smov [#allocation11]  }
  0x44   : > { %s509_s24 = sshll.u32 %s2883_s1, 4  ;;  %s2884_s19 = smov [#allocation14]   ;;  %s510_s24 = int_to_ptr.vmem [resolvable:$true] %s509_s24 }
  0x45   : > { %s541_s2 = sshll.u32 %s2884_s19, 4  ;;  %s2613_s0 = scalar_lea.vmem %s510_s24, 1024  ;;  %s542_s2 = int_to_ptr.vmem [resolvable:$true] %s541_s2 }
  0x46   : > { %p2614_p11 = scmp.ne.s32.totalorder %s510_s24, %s2613_s0  ;;  %p2621_p0 = scmp.lt.s32.totalorder %s510_s24, %s510_s24 }
  0x47   : > { %p2622_p2 = scmp.lt.s32.totalorder %s2613_s0, %s2613_s0 }
  0x48   : > { %p2616_p12 = pnand %p2614_p11, %p3041_p7 }
  0x49   : > { %2343 = dma.hbm_to_vmem [thread:$0]  (!%p3031_p6), %s3620_s10, 1024, %s3037_s22, [#allocation13], %s3589_s25, %s3589_s25, %s3590_s5  }
  0x4a   : > { %p2617_p13 = pneg %p2616_p12  ;;  %p2623_p5 = por %p2622_p2, %p2621_p0 }
  0x4c   : > { %p2624_p8 = pnand %p2623_p5, %p2617_p13 }
  0x4e   : > { %2627 = shalt.err (!%p2624_p8)
}
  0x4f   : > { %s3621_s8 = sld [smem:[#allocation38_spill]]  ;;  %s2639_s21 = scalar_lea.vmem %s542_s2, 1024 }
  0x50   : > { %p2640_p9 = scmp.ne.s32.totalorder %s542_s2, %s2639_s21  ;;  %p2647_p12 = scmp.lt.s32.totalorder %s542_s2, %s542_s2 }
  0x51   : > { %p2648_p0 = scmp.lt.s32.totalorder %s2639_s21, %s2639_s21 }
  0x52   : > { %p2642_p10 = pnand %p2640_p9, %p3041_p7 }
  0x53   : > { %p2649_p13 = por %p2648_p0, %p2647_p12 }
  0x54   : > { %p2643_p11 = pneg %p2642_p10 }
  0x55   : > { %2340 = dma.hbm_to_vmem [thread:$0]  (!%p3031_p6), %s3621_s8, 1024, %s510_s24, [#allocation10], %s3589_s25, %s3589_s25, %s3590_s5  }
  0x56   : > { %p2650_p2 = pnand %p2649_p13, %p2643_p11 }
  0x58   : > { %2653 = shalt.err (!%p2650_p2)
}
  0x59   : > { %s3622_s12 = sld [smem:[#allocation40_spill]]  ;;  %s3591_s20 = sadd.s32 4294967294, %s2876_s29  }
  0x5a   : > { %s3107_s23 = sadd.s32 1, %s2876_s29   ;;  %s53_s24 = sadd.s32 1, %s2872_s28 }
  0x5b   : > { %3623 = sst [smem:[#allocation31_spill]] %s3107_s23  ;;  %s50_s0 = ssub.s32 %s2876_s29, %s3107_s23 }
  0x5c   : > { %p60_p7 = scmp.ne.s32.totalorder %s2872_s28, %s2868_s27  ;;  %p51_p5 = scmp.eq.s32.totalorder %s50_s0, 0 }
  0x5d   : > { %p61_p8 = scmp.eq.s32.totalorder %s2876_s29, 0  ;;  %p66_p9 = scmp.ne.s32.totalorder %s2868_s27, %s2864_s26 }
  0x5e   : > { %p368_p10 = scmp.eq.s32.totalorder %s3017_s30, 1  ;;  %p374_p0 = scmp.eq.s32.totalorder %s3591_s20, 1 }
  0x5f   : > { %2346 = dma.hbm_to_vmem [thread:$0]  (!%p3031_p6), %s3622_s12, 1024, %s542_s2, [#allocation13], %s3589_s25, %s3589_s25, %s3590_s5  }
  0x60   : > { %s3119_s22 = scalar_select %p51_p5, %s2872_s28, %s53_s24  }
  0x61   : > { %p62_p11 = por %p61_p8, %p60_p7  ;;  %p3123_p12 = por %p3593_p1, %p66_p9 }
  0x62   : > { %3624 = sst [smem:[#allocation32_spill]] %s3119_s22  ;;  %p3127_p6 = por %p368_p10, %p60_p7 }
  0x63   : > { %s3625_s2 = scalar_select %p3123_p12, 1, 0 }
  0x64   : > { %s3626_s17 = scalar_select %p3127_p6, 1, 0 }
  0x65   : > { %p2372_p13 = scmp.lt.s32.totalorder %s2876_s29, 2  ;;  %s3135_s21 = sand.u32 1, %s2872_s28  }
  0x66   : > { %p3137_p2 = por %p374_p0, %p66_p9  ;;  %s2027_s19 = sshll.u32 %s3135_s21, 6 }
  0x67   : > { %s2105_s24 = sshll.u32 %s2876_s29, 10  ;;  %s3629_s5 = sld [smem:[#allocation34_spill]] }
  0x68   : > { %s3627_s1 = scalar_select %p3137_p2, 1, 0 }
  0x69   : > { %s562_s20 = scalar_lea.vmem [#allocation3], %s2027_s19  ;;  %p3148_p7 = pnand %p2372_p13, %p62_p11 }
  0x6a   : > { %3628 = sst [smem:[#allocation33_spill]] %s3627_s1  ;;  %s569_s8 = sshll.u32 %s562_s20, 4  ;;  %s3152_s8 = int_to_ptr.vmem [resolvable:$true] %s569_s8 }
  0x6b   : > { %p2656_p8 = pneg %p3148_p7 }
  0x6d   : > { %s3146_s6 = scalar_lea.hbm %s3629_s5, %s2105_s24  ;;  %s2659_s19 = scalar_lea.hbm %s3629_s5, 2048 }
  0x6e   : > { %s2654_s28 = scalar_lea.hbm %s3146_s6, 1024  ;;  %p2660_p11 = scmp.lt.s32.totalorder %s3146_s6, %s3629_s5 }
  0x6f   : > { %p2655_p5 = scmp.ne.s32.totalorder %s3146_s6, %s2654_s28  ;;  %p2661_p0 = scmp.lt.s32.totalorder %s2659_s19, %s2654_s28 }
  0x71   : > { %p2657_p9 = pnand %p2656_p8, %p2655_p5  ;;  %p2662_p13 = por %p2661_p0, %p2660_p11 }
  0x73   : > { %p2658_p10 = pneg %p2657_p9 }
  0x75   : > { %p2663_p4 = pnand %p2662_p13, %p2658_p10 }
  0x77   : > { %2666 = shalt.err (!%p2663_p4)
}
  0x78   : > { %s2667_s12 = scalar_lea.vmem %s3152_s8, 1024  ;;  %s2885_s25 = smov [#allocation3]  }
  0x79   : > { %p2668_p1 = scmp.ne.s32.totalorder %s3152_s8, %s2667_s12  ;;  %s2672_s20 = sshll.u32 %s2885_s25, 4  ;;  %s2673_s20 = int_to_ptr.vmem [resolvable:$false] %s2672_s20 }
  0x7a   : > { %s2674_s22 = scalar_lea.vmem %s2673_s20, 2048  ;;  %p2675_p2 = scmp.lt.s32.totalorder %s3152_s8, %s2673_s20 }
  0x7b   : > { %p2670_p5 = pnand %p2668_p1, %p2656_p8  ;;  %p2676_p6 = scmp.lt.s32.totalorder %s2674_s22, %s2667_s12 }
  0x7d   : > { %p2671_p9 = pneg %p2670_p5  ;;  %p2677_p12 = por %p2676_p6, %p2675_p2 }
  0x7f   : > { %p2678_p11 = pnand %p2677_p12, %p2671_p9 }
  0x81   : > { %2681 = shalt.err (!%p2678_p11)
}
  0x82   : > { %s3631_s28 = smov 4   ;;  %s3632_s19 = smov 64  }
  0x83   : > { %s3633_s24 = scalar_lea.sflag [#allocation4], %s3135_s21  ;;  %s2030_s0 = sshll.u32 %s3135_s21, 3 }
  0x84   : > { %2350 = dma.hbm_to_vmem [thread:$0]  (!%p3148_p7), %s3146_s6, 1024, %s3152_s8, %s3633_s24, %s3632_s19, %s3632_s19, %s3631_s28  }
  0x85   : > { %s2031_s25 = sshll.u32 %s2876_s29, 7  ;;  %s3634_s20 = sld [smem:[#allocation35_spill]] }
  0x86   : > { %s583_s23 = scalar_lea.vmem [#allocation6], %s2030_s0  ;;  %s3635_s26 = sand.u32 1, %s2876_s29  }
  0x87   : > { %s590_s1 = sshll.u32 %s583_s23, 4  ;;  %s580_s13 = scalar_lea.sflag [#allocation7], %s3635_s26  ;;  %s591_s1 = int_to_ptr.vmem [resolvable:$true] %s590_s1 }
  0x8b   : > { %s3190_s5 = scalar_lea.hbm %s3634_s20, %s2031_s25  ;;  %s2687_s21 = scalar_lea.hbm %s3634_s20, 256 }
  0x8c   : > { %s2682_s16 = scalar_lea.hbm %s3190_s5, 128  ;;  %p2688_p6 = scmp.lt.s32.totalorder %s3190_s5, %s3634_s20 }
  0x8d   : > { %p2683_p1 = scmp.ne.s32.totalorder %s3190_s5, %s2682_s16  ;;  %p2689_p2 = scmp.lt.s32.totalorder %s2687_s21, %s2682_s16 }
  0x8f   : > { %p2685_p4 = pnand %p2683_p1, %p2656_p8  ;;  %p2690_p10 = por %p2689_p2, %p2688_p6 }
  0x91   : > { %p2686_p12 = pneg %p2685_p4 }
  0x93   : > { %p2691_p0 = pnand %p2690_p10, %p2686_p12 }
  0x95   : > { %2694 = shalt.err (!%p2691_p0)
}
  0x96   : > { %s2695_s23 = scalar_lea.vmem %s591_s1, 128  ;;  %s2886_s26 = smov [#allocation6]  }
  0x97   : > { %p2696_p13 = scmp.ne.s32.totalorder %s591_s1, %s2695_s23  ;;  %s2700_s24 = sshll.u32 %s2886_s26, 4  ;;  %s2701_s24 = int_to_ptr.vmem [resolvable:$false] %s2700_s24 }
  0x98   : > { %s2702_s0 = scalar_lea.vmem %s2701_s24, 256  ;;  %p2703_p11 = scmp.lt.s32.totalorder %s591_s1, %s2701_s24 }
  0x99   : > { %p2698_p5 = pnand %p2696_p13, %p2656_p8  ;;  %p2704_p1 = scmp.lt.s32.totalorder %s2702_s0, %s2695_s23 }
  0x9b   : > { %p2699_p9 = pneg %p2698_p5  ;;  %p2705_p4 = por %p2704_p1, %p2703_p11 }
  0x9d   : > { %p2706_p3 = pnand %p2705_p4, %p2699_p9 }
  0x9f   : > { %2709 = shalt.err (!%p2706_p3)
}
  0xa0   : > { %2353 = dma.hbm_to_vmem [thread:$0]  (!%p3148_p7), %s3190_s5, 128, %s591_s1, %s580_s13  }
  0xa1   : > { %p3636_p12 = scmp.ne.s32.totalorder %s3615_s18, 0 }
  0xa2   : > { %s3215_s16 = sand.u32 (!%p3636_p12), 1, %s2868_s27   ;;  %p3637_p8 = scmp.ne.s32.totalorder (!%p3636_p12), %s3625_s2, 0 }
  0xa3   : > { %599 = sbr.rel (%p3636_p12) target bundleno = 2508 (0x9cc), region = 76  ;;  %s2033_s25 = sshll.u32 (!%p3636_p12), %s3215_s16, 6 }
  0xa4   : > { %s602_s12 = scalar_lea.sflag (!%p3636_p12), [#allocation4], %s3215_s16  ;;  %s3219_s22 = scalar_lea.vmem (!%p3636_p12), [#allocation3], %s2033_s25 }
  0xa8   : > { %2831 = dma.done.wait (%p3637_p8), %s602_s12, 1024  }
  0xa9   : > { %2833 = vsyncadd (%p3637_p8), %s602_s12, 4294966272  ;;  %s610_s10 = sand.u32 1, %s3017_s30   ;;  %s3227_s13 = sshll.u32 %s3215_s16, 3 }
  0xaa   : > { %s611_s18 = scalar_lea.sflag [#allocation7], %s610_s10  ;;  %s614_s5 = scalar_lea.vmem [#allocation6], %s3227_s13 }
  0xab   : > { %2835 = dma.done.wait (%p3637_p8), %s611_s18, 128  }
  0xac   : > { %2837 = vsyncadd (%p3637_p8), %s611_s18, 4294967168  ;;  %p3638_p3 = scmp.eq.s32.totalorder %s3017_s30, 0 }
  0xae   : > { %2839 = dma.done.wait (%p3638_p3), [#allocation7], 1024   ;;  %p3639_p7 = pmov %p3638_p3 }
  0xaf   : > { %p3640_p6 = pmov %p3638_p3 }
  0xb0   : > { %2841 = vsyncadd (%p3639_p7), [#allocation7], 4294966272 }
  0xb1   : > { %2843 = dma.done.wait (%p3640_p6), [#allocation10], 2048   ;;  %p3641_p2 = pmov %p3638_p3 }
  0xb3   : > { %2845 = vsyncadd (%p3641_p2), [#allocation10], 4294965248  ;;  %p3642_p10 = pmov %p3641_p2 }
  0xb4   : > { %p3643_p0 = pmov %p3641_p2 }
  0xb5   : > { %2847 = dma.done.wait (%p3642_p10), [#allocation13], 2048  }
  0xb6   : > { %2849 = vsyncadd (%p3643_p0), [#allocation13], 4294965248  ;;  %v2432_v0 = vld [vmem:[#allocation8 + $0x38] sm:$0xff]   ;;  %v2433_v1 = vld [vmem:[#allocation8 + $0x30] sm:$0xff]   ;;  %s1008_s21 = sld [smem:[#allocation2]]  ;;  %vm1054_vm0 = vcmask 130112  }
  0xb7   : > { %2167 = vmatprep.subr.bf16.mxu0 %v2432_v0  ;;  %v2434_v2 = vld [vmem:[#allocation8 + $0x28] sm:$0xff]   ;;  %v2435_v3 = vld [vmem:[#allocation8 + $0x20] sm:$0xff]   ;;  %v3249_v4 = vld [vmem:[%s3219_s22] sm:$0xff]   ;;  %vm1119_vm1 = vcmask 1041409   ;;  %vm1121_vm2 = vcmask 1042434   ;;  %vm1123_vm3 = vcmask 1043459  }
  0xb8   : > { %2168 = vmatpush3.bf16.msra.mxu0 %v2432_v0  ;;  %2183 = vmatprep.mubr.bf16.mxu0 %v3249_v4  ;;  %v2436_v5 = vld [vmem:[#allocation8 + $0x18] sm:$0xff]   ;;  %v2437_v6 = vld [vmem:[#allocation8 + $0x10] sm:$0xff]   ;;  %v2438_v7 = vld [vmem:[#allocation8 + $0x8] sm:$0xff]   ;;  %vm1125_vm4 = vcmask 1044484   ;;  %vm1127_vm5 = vcmask 1045509   ;;  %vm1129_vm6 = vcmask 1046534  }
  0xb9   : > { %2169 = vmatprep.subr.bf16.mxu0 %v2433_v1  ;;  %v2439_v8 = vld [vmem:[#allocation8] sm:$0xff]   ;;  %v3253_v9 = vld [vmem:[%s3219_s22 + $0x8] sm:$0xff]   ;;  %v3261_v11 = vld [vmem:[%s3219_s22 + $0x18] sm:$0xff]   ;;  %vm1131_vm7 = vcmask 1047559   ;;  %vm1135_vm9 = vcmask 130048   ;;  %s2888_s28 = smov 32  }
  0xba   : > { %v3256_v10 = vld [vmem:[%s3219_s22 + $0x10] sm:$0xff]   ;;  %v3264_v12 = vld [vmem:[%s3219_s22 + $0x20] sm:$0xff]   ;;  %v3269_v13 = vld [vmem:[%s3219_s22 + $0x28] sm:$0xff]   ;;  %s2889_s19 = smov 16   ;;  %s2890_s23 = smov 96   ;;  %vm2892_vm11 = vmmov 0  }
  0xbb   : > { %v3272_v14 = vld [vmem:[%s3219_s22 + $0x30] sm:$0xff]   ;;  %v3277_v15 = vld [vmem:[%s3219_s22 + $0x38] sm:$0xff]   ;;  %v3283_v16 = vld [vmem:[%s3571_s3] ss:$0 sm:$0xff]  ;;  %s2891_s26 = smov 48   ;;  %s2893_s24 = smov 64  }
  0xbc   : > { %2170 = vmatpush3.bf16.msra.mxu0 %v2433_v1  ;;  %v3295_v32 = vld [vmem:[%s3572_s4] ss:$0 sm:$0xff]  ;;  %s2894_s0 = smov 80   ;;  %s2895_s25 = smov 112   ;;  %vm1186_vm12 = vcmask 261120   ;;  %vm1188_vm13 = vcmask 392192  }
  0xbd   : > { %2171 = vmatprep.subr.bf16.mxu0 %v2434_v2  ;;  %vm1190_vm14 = vcmask 523264   ;;  %vm1192_vm15 = vcmask 654336   ;;  %s683_s12 = scalar_lea.vmem [#allocation15], %s3227_s13  ;;  %s2897_s1 = smov 1  }
  0xbe   : > { %s690_s6 = scalar_lea.vmem [#allocation16], %s3227_s13  ;;  %s2898_s8 = smov 127  }
  0xbf   : > { %s3452_s22 = scalar_lea.sflag [#allocation17], %s610_s10  ;;  %p3644_p5 = scmp.ne.s32.totalorder %s3626_s17, 0 }
  0xc0   : > { %2172 = vmatpush3.bf16.msra.mxu0 %v2434_v2 }
  0xc1   : > { %2173 = vmatprep.subr.bf16.mxu0 %v2435_v3 }
  0xc4   : > { %2174 = vmatpush3.bf16.msra.mxu0 %v2435_v3 }
  0xc5   : > { %2175 = vmatprep.subr.bf16.mxu0 %v2436_v5 }
  0xc8   : > { %2176 = vmatpush3.bf16.msra.mxu0 %v2436_v5 }
  0xc9   : > { %2177 = vmatprep.subr.bf16.mxu0 %v2437_v6 }
  0xcc   : > { %2178 = vmatpush3.bf16.msra.mxu0 %v2437_v6 }
  0xcd   : > { %2179 = vmatprep.subr.bf16.mxu0 %v2438_v7 }
  0xd0   : > { %2180 = vmatpush3.bf16.msra.mxu0 %v2438_v7 }
  0xd1   : > { %2181 = vmatprep.subr.bf16.mxu0 %v2439_v8 }
  0xd4   : > { %2182 = vmatpush3.bf16.msra.mxu0 %v2439_v8 }
  0xd7   : > { %2184 = vmatmul.mubr.bf16.vlgmr.msra.gmra.mxu0 %v3253_v9 }
  0xd8   : > { %2187 = vmatprep.mubr.bf16.mxu0 %v3256_v10 }
  0xdf   : > { %2188 = vmatmul.mubr.bf16.gmra.mxu0 %v3261_v11 }
  0xe0   : > { %2191 = vmatprep.mubr.bf16.mxu0 %v3264_v12 }
  0xe7   : > { %2192 = vmatmul.mubr.bf16.gmra.mxu0 %v3269_v13 }
  0xe8   : > { %2195 = vmatprep.mubr.bf16.mxu0 %v3272_v14 }
  0xef   : > { %2196 = vmatmul.mubr.bf16.gmra.mxu0 %v3277_v15 }
 0x197   : > { %v2185_v17 = vpop.f32.mrf.mxu0 }
 0x198   : > { %v883_v18 = vadd.f32 %v2185_v17, %v3283_v16 }
 0x199   : > { %v874_v19 = vpop.f32.mrf.mxu0 }
 0x19a   : > { %2480 = vtanh.f32 %v883_v18  ;;  %v875_v20 = vadd.f32 %v3283_v16, %v874_v19 }
 0x19b   : > { %v2186_v21 = vpop.f32.mrf.mxu0 }
 0x19c   : > { %2482 = vtanh.f32 %v875_v20  ;;  %v886_v22 = vadd.f32 %v2186_v21, %v3283_v16 }
 0x19d   : > { %v877_v23 = vpop.f32.mrf.mxu0 }
 0x19e   : > { %2484 = vtanh.f32 %v886_v22  ;;  %v878_v24 = vadd.f32 %v3283_v16, %v877_v23 }
 0x19f   : > { %v2189_v25 = vpop.f32.mrf.mxu0 }
 0x1a0   : > { %2486 = vtanh.f32 %v878_v24  ;;  %v899_v26 = vadd.f32 %v2189_v25, %v3283_v16 }
 0x1a1   : > { %v890_v27 = vpop.f32.mrf.mxu0 }
 0x1a2   : > { %2488 = vtanh.f32 %v899_v26  ;;  %v891_v28 = vadd.f32 %v3283_v16, %v890_v27 }
 0x1a3   : > { %v2190_v29 = vpop.f32.mrf.mxu0 }
 0x1a4   : > { %v902_v30 = vadd.f32 %v2190_v29, %v3283_v16  ;;  %2490 = vtanh.f32 %v891_v28 }
 0x1a5   : > { %v893_v31 = vpop.f32.mrf.mxu0 }
 0x1a6   : > { %2492 = vtanh.f32 %v902_v30  ;;  %v894_v33 = vadd.f32 %v3283_v16, %v893_v31  ;;  %v1043_v31 = vlaneseq }
 0x1a7   : > { %v2481_v34 = vpop.eup %2480  ;;  %v2193_v35 = vpop.f32.mrf.mxu0 }
 0x1a8   : > { %2494 = vtanh.f32 %v894_v33  ;;  %v915_v36 = vadd.f32 %v2193_v35, %v3283_v16  ;;  %v962_v37 = vmul.f32 %v2481_v34, %v3295_v32  ;;  %v3322_v35 = vand.u32 127, %v1043_v31 }
 0x1a9   : > { %v2483_v38 = vpop.eup %2482  ;;  %v906_v39 = vpop.f32.mrf.mxu0 }
 0x1aa   : > { %2496 = vtanh.f32 %v915_v36  ;;  %v907_v40 = vadd.f32 %v3283_v16, %v906_v39  ;;  %980 = vadd.xlane.f32.xlu1 %v962_v37  ;;  %v960_v41 = vmul.f32 %v2483_v38, %v3295_v32  ;;  %v1049_v37 = vadd.s32 4294967288, %v3322_v35 }
 0x1ab   : > { %v2485_v42 = vpop.eup %2484  ;;  %v2194_v43 = vpop.f32.mrf.mxu0  ;;  %v1009_v38 = vstv %s1008_s21  ;;  %s696_s21 = scalar_lea.vmem [#allocation18], %s3215_s16 }
 0x1ac   : > { %v918_v44 = vadd.f32 %v2194_v43, %v3283_v16  ;;  %976 = vadd.xlane.f32.xlu0 %v960_v41  ;;  %v963_v45 = vmul.f32 %v2485_v42, %v3295_v32  ;;  %2498 = vtanh.f32 %v907_v40  ;;  %v3325_v40 = vshrl.u32 %v1043_v31, 7  ;;  %v3337_v31 = vld [vmem:[%s614_s5] sm:$0xff]  ;;  %s2899_s5 = smov [#allocation16]  }
 0x1ad   : > { %v2487_v46 = vpop.eup %2486  ;;  %v909_v47 = vpop.f32.mrf.mxu0  ;;  %vm1026_vm8 = vcmp.gt.f32.partialorder %v3337_v31, 0.5  ;;  %s2714_s2 = sshll.u32 %s2899_s5, 4  ;;  %s2715_s2 = int_to_ptr.vmem [resolvable:$false] %s2714_s2 }
 0x1ae   : > { %2500 = vtanh.f32 %v918_v44  ;;  %v910_v48 = vadd.f32 %v3283_v16, %v909_v47  ;;  %982 = vadd.xlane.f32.xlu1 %v963_v45  ;;  %v961_v49 = vmul.f32 %v2487_v46, %v3295_v32  ;;  %v1052_v44 = vsub.s32 %v1049_v37, %v3325_v40 }
 0x1af   : > { %v2489_v50 = vpop.eup %2488  ;;  %v2197_v51 = vpop.f32.mrf.mxu0 }
 0x1b0   : > { %2502 = vtanh.f32 %v910_v48  ;;  %978 = vadd.xlane.f32.xlu0 %v961_v49  ;;  %v931_v54 = vadd.f32 %v2197_v51, %v3283_v16  ;;  %v966_v56 = vmul.f32 %v2489_v50, %v3295_v32  ;;  %v1047_v48 = vsub.s32 %v3322_v35, %v3325_v40 }
 0x1b1   : > { %v922_v52 = vpop.f32.mrf.mxu0  ;;  %v2491_v53 = vpop.eup %2490 }
 0x1b2   : > { %v923_v55 = vadd.f32 %v3283_v16, %v922_v52  ;;  %v964_v0 = vmul.f32 %v2491_v53, %v3295_v32 }
 0x1b3   : > { %v2493_v57 = vpop.eup %2492  ;;  %v2198_v58 = vpop.f32.mrf.mxu0 }
 0x1b4   : > { %2504 = vtanh.f32 %v923_v55  ;;  %988 = vadd.xlane.f32.xlu0 %v966_v56  ;;  %v967_v59 = vmul.f32 %v2493_v57, %v3295_v32  ;;  %v934_v62 = vadd.f32 %v2198_v58, %v3283_v16 }
 0x1b5   : > { %v2495_v60 = vpop.eup %2494  ;;  %v925_v61 = vpop.f32.mrf.mxu0  ;;  %2506 = vtanh.f32 %v931_v54 }
 0x1b6   : > { %v926_v63 = vadd.f32 %v3283_v16, %v925_v61  ;;  %990 = vadd.xlane.f32.xlu1 %v967_v59  ;;  %v965_v2 = vmul.f32 %v2495_v60, %v3295_v32 }
 0x1b7   : > { %v2497_v1 = vpop.eup %2496 }
 0x1b8   : > { %2508 = vtanh.f32 %v926_v63  ;;  %984 = vadd.xlane.f32.xlu0 %v964_v0  ;;  %v970_v5 = vmul.f32 %v2497_v1, %v3295_v32 }
 0x1b9   : > { %v2499_v3 = vpop.eup %2498  ;;  %2510 = vtanh.f32 %v934_v62 }
 0x1ba   : > { %986 = vadd.xlane.f32.xlu1 %v965_v2  ;;  %v968_v16 = vmul.f32 %v2499_v3, %v3295_v32 }
 0x1bb   : > { %v2501_v6 = vpop.eup %2500 }
 0x1bc   : > { %996 = vadd.xlane.f32.xlu0 %v970_v5  ;;  %v971_v7 = vmul.f32 %v2501_v6, %v3295_v32 }
 0x1bd   : > { %v2503_v8 = vpop.eup %2502 }
 0x1be   : > { %998 = vadd.xlane.f32.xlu1 %v971_v7  ;;  %v969_v17 = vmul.f32 %v2503_v8, %v3295_v32 }
 0x1c0   : > { %992 = vadd.xlane.f32.xlu0 %v968_v16 }
 0x1c1   : > { %v2505_v18 = vpop.eup %2504 }
 0x1c2   : > { %994 = vadd.xlane.f32.xlu1 %v969_v17  ;;  %v972_v19 = vmul.f32 %v2505_v18, %v3295_v32  ;;  %v2507_v20 = vpop.eup %2506 }
 0x1c3   : > { %v974_v23 = vmul.f32 %v2507_v20, %v3295_v32 }
 0x1c4   : > { %1000 = vadd.xlane.f32.xlu0 %v972_v19 }
 0x1c5   : > { %v2509_v21 = vpop.eup %2508 }
 0x1c6   : > { %v973_v22 = vmul.f32 %v2509_v21, %v3295_v32  ;;  %v2511_v24 = vpop.eup %2510 }
 0x1c7   : > { %v975_v25 = vmul.f32 %v2511_v24, %v3295_v32 }
 0x1c8   : > { %1002 = vadd.xlane.f32.xlu1 %v973_v22  ;;  %1004 = vadd.xlane.f32.xlu0 %v974_v23 }
 0x1cc   : > { %1006 = vadd.xlane.f32.xlu1 %v975_v25 }
 0x233   : > { %v981_v26 = vpop.xlane.xlu1 %980 }
 0x234   : > { %v1012_v49 = vadd.f32 %v1009_v38, %v981_v26 }
 0x235   : > { %v977_v27 = vpop.xlane.xlu0 %976 }
 0x236   : > { %v1010_v43 = vadd.f32 %v1009_v38, %v977_v27  ;;  %v1059_v60 = vrot.slane %v1012_v49, %v1047_v48 }
 0x237   : > { %v983_v29 = vpop.xlane.xlu1 %982 }
 0x238   : > { %v1013_v45 = vadd.f32 %v1009_v38, %v983_v29  ;;  %v1048_v53 = vrot.slane %v1010_v43, %v1047_v48 }
 0x239   : > { %v979_v28 = vpop.xlane.xlu0 %978 }
 0x23a   : > { %v1011_v32 = vadd.f32 %v1009_v38, %v979_v28  ;;  %v1063_v54 = vrot.slane %v1013_v45, %v1052_v44 }
 0x23c   : > { %v1053_v50 = vrot.slane %v1011_v32, %v1052_v44  ;;  %v1064_v1 = vsel %vm1054_vm0, %v1063_v54, %v1059_v60  ;;  %v2452_v54 = vld [vmem:[#allocation9 + $0x18] sm:$0xff]  }
 0x23d   : > { %v989_v30 = vpop.xlane.xlu0 %988 }
 0x23e   : > { %v1055_v61 = vsel %vm1054_vm0, %v1053_v50, %v1048_v53  ;;  %v1016_v62 = vadd.f32 %v1009_v38, %v989_v30  ;;  %v2451_v53 = vld [vmem:[#allocation9 + $0x20] sm:$0xff]  }
 0x23f   : > { %v991_v33 = vpop.xlane.xlu1 %990  ;;  %v1120_v5 = vsel %vm1119_vm1, %v1064_v1, %v1055_v61 }
 0x240   : > { %v1017_v55 = vadd.f32 %v1009_v38, %v991_v33  ;;  %v1077_v17 = vrot.slane %v1016_v62, %v1047_v48 }
 0x241   : > { %v985_v34 = vpop.xlane.xlu0 %984 }
 0x242   : > { %v1014_v46 = vadd.f32 %v1009_v38, %v985_v34  ;;  %v1081_v2 = vrot.slane %v1017_v55, %v1052_v44  ;;  %v2453_v55 = vld [vmem:[#allocation9 + $0x10] sm:$0xff]  }
 0x243   : > { %v987_v36 = vpop.xlane.xlu1 %986 }
 0x244   : > { %v1015_v41 = vadd.f32 %v1009_v38, %v987_v36  ;;  %v1068_v57 = vrot.slane %v1014_v46, %v1047_v48  ;;  %v1082_v22 = vsel %vm1054_vm0, %v1081_v2, %v1077_v17  ;;  %v2887_v46 = vmov 0.0  }
 0x245   : > { %v997_v39 = vpop.xlane.xlu0 %996  ;;  %2199 = vmatprep.subr.bf16.mxu1 %v2887_v46  ;;  %2219 = vmatprep.subr.bf16.mxu0 %v2887_v46 }
 0x246   : > { %v1072_v51 = vrot.slane %v1015_v41, %v1052_v44  ;;  %v1020_v19 = vadd.f32 %v1009_v38, %v997_v39  ;;  %2200 = vmatpush3.bf16.msra.mxu1 %v3277_v15  ;;  %2215 = vmatprep.mubr.msk.bf16.mxu1 %vm2892_vm11, %v2887_v46 }
 0x247   : > { %v999_v42 = vpop.xlane.xlu1 %998  ;;  %2201 = vmatprep.subr.bf16.mxu1 %v2887_v46  ;;  %2235 = vmatprep.mubr.msk.bf16.mxu0 %vm2892_vm11, %v2887_v46 }
 0x248   : > { %v1073_v63 = vsel %vm1054_vm0, %v1072_v51, %v1068_v57  ;;  %v1021_v3 = vadd.f32 %v1009_v38, %v999_v42  ;;  %v1095_v29 = vrot.slane %v1020_v19, %v1047_v48  ;;  %v2449_v51 = vld [vmem:[#allocation9 + $0x30] sm:$0xff]   ;;  %v2455_v57 = vld [vmem:[#allocation9] sm:$0xff]   ;;  %v2456_v19 = vld [vmem:[#allocation11 + $0x38] sm:$0xff]  }
 0x249   : > { %v993_v47 = vpop.xlane.xlu0 %992  ;;  %v1122_v18 = vsel %vm1121_vm2, %v1073_v63, %v1120_v5  ;;  %v1157_v63 = vmul.u32 16, %v3325_v40  ;;  %vm1194_vm2 = vcmask 785408  }
 0x24a   : > { %v1018_v58 = vadd.f32 %v1009_v38, %v993_v47  ;;  %v1099_v23 = vrot.slane %v1021_v3, %v1052_v44  ;;  %v1124_v28 = vsel %vm1123_vm3, %v1082_v22, %v1122_v18  ;;  %2202 = vmatpush3.bf16.msra.mxu1 %v3272_v14  ;;  %vm1196_vm3 = vcmask 916480  }
 0x24b   : > { %v995_v52 = vpop.xlane.xlu1 %994  ;;  %2203 = vmatprep.subr.bf16.mxu1 %v2887_v46 }
 0x24c   : > { %v1019_v56 = vadd.f32 %v1009_v38, %v995_v52  ;;  %v1086_v6 = vrot.slane %v1018_v58, %v1047_v48  ;;  %v1100_v36 = vsel %vm1054_vm0, %v1099_v23, %v1095_v29  ;;  %v2450_v52 = vld [vmem:[#allocation9 + $0x28] sm:$0xff]  }
 0x24d   : > { %v1001_v59 = vpop.xlane.xlu0 %1000  ;;  %v2462_v29 = vld [vmem:[#allocation11 + $0x8] sm:$0xff]  }
 0x24e   : > { %v1090_v0 = vrot.slane %v1019_v56, %v1052_v44  ;;  %v1022_v7 = vadd.f32 %v1009_v38, %v1001_v59  ;;  %2204 = vmatpush3.bf16.msra.mxu1 %v3269_v13  ;;  %v2454_v56 = vld [vmem:[#allocation9 + $0x8] sm:$0xff]   ;;  %v1159_v59 = vadd.s32 1, %v3325_v40 }
 0x24f   : > { %2205 = vmatprep.subr.bf16.mxu1 %v2887_v46 }
 0x250   : > { %v1091_v21 = vsel %vm1054_vm0, %v1090_v0, %v1086_v6  ;;  %v1104_v26 = vrot.slane %v1022_v7, %v1047_v48  ;;  %v1160_v0 = vmul.u32 16, %v1159_v59 }
 0x251   : > { %v1003_v8 = vpop.xlane.xlu1 %1002  ;;  %v1005_v16 = vpop.xlane.xlu0 %1004  ;;  %v1126_v33 = vsel %vm1125_vm4, %v1091_v21, %v1124_v28  ;;  %v2461_v28 = vld [vmem:[#allocation11 + $0x10] sm:$0xff]  }
 0x252   : > { %v1023_v20 = vadd.f32 %v1009_v38, %v1003_v8  ;;  %v1024_v25 = vadd.f32 %v1009_v38, %v1005_v16  ;;  %v1128_v32 = vsel %vm1127_vm5, %v1100_v36, %v1126_v33  ;;  %2206 = vmatpush3.bf16.msra.mxu1 %v3264_v12  ;;  %vm1161_vm1 = vcmp.lt.s32.totalorder %v3322_v35, %v1160_v0  ;;  %v2063_v33 = vld [vmem:[%s3575_s7] ss:$0 sm:$0xff] }
 0x253   : > { %2207 = vmatprep.subr.bf16.mxu1 %v2887_v46 }
 0x254   : > { %v1108_v24 = vrot.slane %v1023_v20, %v1052_v44  ;;  %v1113_v37 = vrot.slane %v1024_v25, %v1047_v48  ;;  %v2458_v20 = vld [vmem:[#allocation11 + $0x28] sm:$0xff]  }
 0x255   : > { %v1007_v27 = vpop.xlane.xlu1 %1006 }
 0x256   : > { %v1025_v30 = vadd.f32 %v1009_v38, %v1007_v27  ;;  %v1109_v34 = vsel %vm1054_vm0, %v1108_v24, %v1104_v26  ;;  %2208 = vmatpush3.bf16.msra.mxu1 %v3261_v11  ;;  %v2459_v26 = vld [vmem:[#allocation11 + $0x20] sm:$0xff]   ;;  %v2460_v27 = vld [vmem:[#allocation11 + $0x18] sm:$0xff]  }
 0x257   : > { %v1130_v42 = vsel %vm1129_vm6, %v1109_v34, %v1128_v32  ;;  %2209 = vmatprep.subr.bf16.mxu1 %v2887_v46 }
 0x258   : > { %v1117_v39 = vrot.slane %v1025_v30, %v1052_v44  ;;  %v1147_v44 = vsel %vm1026_vm8, 1.0, %v2887_v46  ;;  %v2463_v30 = vld [vmem:[#allocation11] sm:$0xff]  }
 0x259   : > { %v1148_v47 = vsel %vm1135_vm9, %v1147_v44, -inf }
 0x25a   : > { %v1118_v41 = vsel %vm1054_vm0, %v1117_v39, %v1113_v37  ;;  %2210 = vmatpush3.bf16.msra.mxu1 %v3256_v10  ;;  %vm1158_vm0 = vcmp.ge.s32.totalorder %v3322_v35, %v1157_v63  ;;  %v2457_v35 = vld [vmem:[#allocation11 + $0x30] sm:$0xff]  }
 0x25b   : > { %v1132_v38 = vsel %vm1131_vm7, %v1118_v41, %v1130_v42  ;;  %2211 = vmatprep.subr.bf16.mxu1 %v2887_v46  ;;  %vm1162_vm4 = vmand %vm1158_vm0, %vm1161_vm1  ;;  %vm1481_vm7 = vcmask 7168  }
 0x25c   : > { %v1134_v43 = vsel %vm1026_vm8, %v1132_v38, -1e+30  ;;  %vm2060_vm5 = vmpackc.low %vm1162_vm4, %vm1162_vm4  ;;  %v2896_v38 = vmov 0  }
 0x25d   : > { %v1136_v45 = vsel %vm1135_vm9, %v1134_v43, -inf  ;;  %2430 = vset.pattern.permute.xlu1 %v2896_v38  ;;  %2431 = vset.pattern.permute.xlu0 %v2896_v38 }
 0x25e   : > { %1137 = vmax.xlane.f32.xlu0 %v1136_v45  ;;  %2212 = vmatpush3.bf16.msra.mxu1 %v3253_v9 }
 0x25f   : > { %2213 = vmatprep.subr.bf16.mxu1 %v2887_v46 }
 0x262   : > { %1149 = vmax.xlane.f32.xlu0 %v1148_v47  ;;  %2214 = vmatpush3.bf16.msra.mxu1 %v3249_v4  ;;  %v2448_v4 = vld [vmem:[#allocation9 + $0x38] sm:$0xff]  }
 0x263   : > { %2239 = vmatprep.subr.bf16.mxu1 %v2887_v46  ;;  %2220 = vmatpush3.bf16.msra.mxu0 %v2448_v4 }
 0x264   : > { %2221 = vmatprep.subr.bf16.mxu0 %v2887_v46 }
 0x267   : > { %2222 = vmatpush3.bf16.msra.mxu0 %v2449_v51 }
 0x268   : > { %2223 = vmatprep.subr.bf16.mxu0 %v2887_v46 }
 0x26b   : > { %2224 = vmatpush3.bf16.msra.mxu0 %v2450_v52 }
 0x26c   : > { %2225 = vmatprep.subr.bf16.mxu0 %v2887_v46 }
 0x26f   : > { %2226 = vmatpush3.bf16.msra.mxu0 %v2451_v53 }
 0x270   : > { %2227 = vmatprep.subr.bf16.mxu0 %v2887_v46 }
 0x273   : > { %2228 = vmatpush3.bf16.msra.mxu0 %v2452_v54 }
 0x274   : > { %2229 = vmatprep.subr.bf16.mxu0 %v2887_v46 }
 0x277   : > { %2230 = vmatpush3.bf16.msra.mxu0 %v2453_v55 }
 0x278   : > { %2231 = vmatprep.subr.bf16.mxu0 %v2887_v46 }
 0x27b   : > { %2232 = vmatpush3.bf16.msra.mxu0 %v2454_v56 }
 0x27c   : > { %2233 = vmatprep.subr.bf16.mxu0 %v2887_v46 }
 0x27f   : > { %2234 = vmatpush3.bf16.msra.mxu0 %v2455_v57 }
 0x280   : > { %2259 = vmatprep.subr.bf16.mxu0 %v2887_v46 }
 0x2e7   : > { %v1138_v13 = vpop.xlane.xlu0 %1137 }
 0x2e8   : > { %v1139_v12 = vsub.f32 %v1134_v43, %v1138_v13  ;;  %v2072_v43 = vld [vmem:[%s3577_s9] ss:$0 sm:$0xff] }
 0x2ea   : > { %v1140_v14 = vmul.f32 1.442695, %v1139_v12 }
 0x2eb   : > { %v1150_v10 = vpop.xlane.xlu0 %1149 }
 0x2ec   : > { %2512 = vpow2.f32 %v1140_v14  ;;  %vm1151_vm10 = vcmp.gt.f32.partialorder %v1150_v10, 0.0  ;;  %v2466_v10 = vld [vmem:[#allocation12 + $0x28] sm:$0xff]  }
 0x2f9   : > { %v2513_v15 = vpop.eup %2512 }
 0x2fa   : > { %v1142_v11 = vsel %vm1135_vm9, %v2513_v15, 0.0 }
 0x2fb   : > { %1143 = vadd.xlane.f32.xlu1 %v1142_v11  ;;  %v2464_v11 = vld [vmem:[#allocation12 + $0x38] sm:$0xff]  }
 0x384   : > { %v1144_v48 = vpop.xlane.xlu1 %1143 }
 0x385   : > { %2514 = vrcp.f32 %v1144_v48  ;;  %v2465_v48 = vld [vmem:[#allocation12 + $0x30] sm:$0xff]  }
 0x392   : > { %v2515_v49 = vpop.eup %2514 }
 0x393   : > { %v1146_v9 = vmul.f32 %v2515_v49, %v2513_v15  ;;  %v2467_v49 = vld [vmem:[#allocation12 + $0x20] sm:$0xff]  }
 0x395   : > { %v1154_v50 = vsel %vm1151_vm10, %v1146_v9, 0.0 }
 0x396   : > { %1167 = vrot.lane.b32.xlu0 %v1154_v50, %s2888_s28  ;;  %1164 = vrot.lane.b32.xlu1 %v1154_v50, %s2889_s19 }
 0x39a   : > { %1179 = vrot.lane.b32.xlu0 %v1154_v50, %s2890_s23  ;;  %1170 = vrot.lane.b32.xlu1 %v1154_v50, %s2891_s26  ;;  %s2099_s23 = sshll.u32 %s3017_s30, 7  ;;  %s1768_s26 = sshll.u32 %s690_s6, 4  ;;  %s1769_s26 = int_to_ptr.vmem [resolvable:$true] %s1768_s26 }
 0x39b   : > { %s2710_s18 = scalar_lea.vmem %s1769_s26, 128  ;;  %p2717_p1 = scmp.lt.s32.totalorder %s1769_s26, %s2715_s2 }
 0x39c   : > { %p2711_p13 = scmp.ne.s32.totalorder %s1769_s26, %s2710_s18 }
 0x39e   : > { %1173 = vrot.lane.b32.xlu1 %v1154_v50, %s2893_s24  ;;  %p2712_p9 = pnand %p2711_p13, %p3644_p5 }
 0x3a0   : > { %p2713_p11 = pneg %p2712_p9 }
 0x3a2   : > { %1176 = vrot.lane.b32.xlu1 %v1154_v50, %s2894_s0 }
 0x3a6   : > { %1182 = vrot.lane.b32.xlu1 %v1154_v50, %s2895_s25  ;;  %s1766_s25 = scalar_lea.hbm %s3583_s15, %s2099_s23 }
 0x408   : > { %v1165_v58 = vpop.permute.xlu1 %1164  ;;  %v1168_v61 = vpop.permute.xlu0 %1167 }
 0x409   : > { %v1185_v62 = vsel %vm1135_vm9, %v1154_v50, %v1165_v58 }
 0x40a   : > { %v1187_v2 = vsel %vm1186_vm12, %v1185_v62, %v1168_v61 }
 0x40c   : > { %v1171_v60 = vpop.permute.xlu1 %1170  ;;  %v1180_v8 = vpop.permute.xlu0 %1179 }
 0x40d   : > { %v1189_v3 = vsel %vm1188_vm13, %v1187_v2, %v1171_v60 }
 0x410   : > { %v1174_v1 = vpop.permute.xlu1 %1173 }
 0x411   : > { %v1191_v5 = vsel %vm1190_vm14, %v1189_v3, %v1174_v1  ;;  %v2468_v3 = vld [vmem:[#allocation12 + $0x18] sm:$0xff]  }
 0x414   : > { %v1177_v6 = vpop.permute.xlu1 %1176 }
 0x415   : > { %v1193_v7 = vsel %vm1192_vm15, %v1191_v5, %v1177_v6 }
 0x416   : > { %v1195_v16 = vsel %vm1194_vm2, %v1193_v7, %v1180_v8  ;;  %v2469_v7 = vld [vmem:[#allocation12 + $0x10] sm:$0xff]   ;;  %v2470_v8 = vld [vmem:[#allocation12 + $0x8] sm:$0xff]  }
 0x418   : > { %v1183_v40 = vpop.permute.xlu1 %1182 }
 0x419   : > { %v1197_v17 = vsel %vm1196_vm3, %v1195_v16, %v1183_v40  ;;  %v2471_v16 = vld [vmem:[#allocation12] sm:$0xff]   ;;  %v2472_v40 = vld [vmem:[#allocation14 + $0x38] sm:$0xff]  }
 0x41a   : > { %v2061_v18 = vpack.c.bf16 %v1197_v17, %v1197_v17  ;;  %v2473_v17 = vld [vmem:[#allocation14 + $0x30] sm:$0xff]  }
 0x41c   : > { %2216 = vmatmul.mubr.msk.bf16.vlgmr.msra.gmra.mxu1 %vm2060_vm5, %v2061_v18  ;;  %v2474_v18 = vld [vmem:[#allocation14 + $0x28] sm:$0xff]  }
 0x41d   : > { %2255 = vmatprep.mubr.msk.bf16.mxu1 %vm2892_vm11, %v2887_v46  ;;  %2240 = vmatpush3.bf16.msra.mxu1 %v2456_v19 }
 0x41e   : > { %2241 = vmatprep.subr.bf16.mxu1 %v2887_v46 }
 0x421   : > { %2242 = vmatpush3.bf16.msra.mxu1 %v2457_v35 }
 0x422   : > { %2243 = vmatprep.subr.bf16.mxu1 %v2887_v46 }
 0x425   : > { %2244 = vmatpush3.bf16.msra.mxu1 %v2458_v20 }
 0x426   : > { %2245 = vmatprep.subr.bf16.mxu1 %v2887_v46 }
 0x429   : > { %2246 = vmatpush3.bf16.msra.mxu1 %v2459_v26 }
 0x42a   : > { %2247 = vmatprep.subr.bf16.mxu1 %v2887_v46 }
 0x42d   : > { %2248 = vmatpush3.bf16.msra.mxu1 %v2460_v27 }
 0x42e   : > { %2249 = vmatprep.subr.bf16.mxu1 %v2887_v46 }
 0x431   : > { %2250 = vmatpush3.bf16.msra.mxu1 %v2461_v28  ;;  %v2475_v28 = vld [vmem:[#allocation14 + $0x20] sm:$0xff]  }
 0x432   : > { %2251 = vmatprep.subr.bf16.mxu1 %v2887_v46 }
 0x435   : > { %2252 = vmatpush3.bf16.msra.mxu1 %v2462_v29  ;;  %v2476_v29 = vld [vmem:[#allocation14 + $0x18] sm:$0xff]  }
 0x436   : > { %2253 = vmatprep.subr.bf16.mxu1 %v2887_v46 }
 0x439   : > { %2254 = vmatpush3.bf16.msra.mxu1 %v2463_v30  ;;  %v2478_v30 = vld [vmem:[#allocation14 + $0x8] sm:$0xff]  }
 0x43a   : > { %2279 = vmatprep.subr.bf16.mxu1 %v2887_v46 }
 0x4dc   : > { %v3391_v21 = vpop.f32.mrf.mxu1 }
 0x4dd   : > { %1240 = vst [vmem:[%s683_s12] sm:$0xff] %v3391_v21  ;;  %v1241_v22 = vpack.c.bf16 %v3391_v21, %v3391_v21 }
 0x4de   : > { %v2217_v23 = vpop.f32.mrf.mxu1 }
 0x4df   : > { %2236 = vmatmul.mubr.bf16.vlgmr.msra.gmra.mxu0 %v1241_v22 }
 0x4e0   : > { %v1237_v24 = vpop.f32.mrf.mxu1  ;;  %2275 = vmatprep.mubr.msk.bf16.mxu0 %vm2892_vm11, %v2887_v46  ;;  %2260 = vmatpush3.bf16.msra.mxu0 %v2464_v11 }
 0x4e1   : > { %2261 = vmatprep.subr.bf16.mxu0 %v2887_v46 }
 0x4e2   : > { %v2218_v25 = vpop.f32.mrf.mxu1 }
 0x4e4   : > { %2262 = vmatpush3.bf16.msra.mxu0 %v2465_v48 }
 0x4e5   : > { %2263 = vmatprep.subr.bf16.mxu0 %v2887_v46 }
 0x4e8   : > { %2264 = vmatpush3.bf16.msra.mxu0 %v2466_v10 }
 0x4e9   : > { %2265 = vmatprep.subr.bf16.mxu0 %v2887_v46 }
 0x4ec   : > { %2266 = vmatpush3.bf16.msra.mxu0 %v2467_v49 }
 0x4ed   : > { %2267 = vmatprep.subr.bf16.mxu0 %v2887_v46 }
 0x4f0   : > { %2268 = vmatpush3.bf16.msra.mxu0 %v2468_v3 }
 0x4f1   : > { %2269 = vmatprep.subr.bf16.mxu0 %v2887_v46 }
 0x4f4   : > { %2270 = vmatpush3.bf16.msra.mxu0 %v2469_v7 }
 0x4f5   : > { %2271 = vmatprep.subr.bf16.mxu0 %v2887_v46 }
 0x4f8   : > { %2272 = vmatpush3.bf16.msra.mxu0 %v2470_v8 }
 0x4f9   : > { %2273 = vmatprep.subr.bf16.mxu0 %v2887_v46 }
 0x4fc   : > { %2274 = vmatpush3.bf16.msra.mxu0 %v2471_v16 }
 0x59f   : > { %v1347_v34 = vpop.f32.mrf.mxu0 }
 0x5a0   : > { %v1348_v36 = vadd.f32 %v2063_v33, %v1347_v34  ;;  %v2479_v33 = vld [vmem:[#allocation14] sm:$0xff]   ;;  %v1531_v34 = vld [vmem:[%s3579_s11] sm:$0x1] }
 0x5a1   : > { %v2237_v37 = vpop.f32.mrf.mxu0 }
 0x5a2   : > { %2516 = vtanh.f32 %v1348_v36 }
 0x5a3   : > { %v1350_v39 = vpop.f32.mrf.mxu0 }
 0x5a5   : > { %v2238_v32 = vpop.f32.mrf.mxu0 }
 0x5af   : > { %v2517_v41 = vpop.eup %2516 }
 0x5b0   : > { %v1354_v42 = vpack.c.bf16 %v2517_v41, %v2517_v41 }
 0x5b2   : > { %2256 = vmatmul.mubr.bf16.vlgmr.msra.gmra.mxu1 %v1354_v42 }
 0x5b3   : > { %2295 = vmatprep.mubr.msk.bf16.mxu1 %vm2892_vm11, %v2887_v46  ;;  %2280 = vmatpush3.bf16.msra.mxu1 %v2472_v40 }
 0x5b4   : > { %2281 = vmatprep.subr.bf16.mxu1 %v2887_v46 }
 0x5b7   : > { %2282 = vmatpush3.bf16.msra.mxu1 %v2473_v17 }
 0x5b8   : > { %2283 = vmatprep.subr.bf16.mxu1 %v2887_v46 }
 0x5bb   : > { %2284 = vmatpush3.bf16.msra.mxu1 %v2474_v18 }
 0x5bc   : > { %2285 = vmatprep.subr.bf16.mxu1 %v2887_v46 }
 0x5bf   : > { %2286 = vmatpush3.bf16.msra.mxu1 %v2475_v28 }
 0x5c0   : > { %2287 = vmatprep.subr.bf16.mxu1 %v2887_v46 }
 0x5c3   : > { %2288 = vmatpush3.bf16.msra.mxu1 %v2476_v29 }
 0x5c4   : > { %2289 = vmatprep.subr.bf16.mxu1 %v2887_v46 }
 0x672   : > { %v1460_v45 = vpop.f32.mrf.mxu1 }
 0x673   : > { %v1461_v44 = vadd.f32 %v2072_v43, %v1460_v45 }
 0x674   : > { %v2257_v47 = vpop.f32.mrf.mxu1 }
 0x675   : > { %1468 = vrot.lane.b32.xlu0 %v1461_v44, %s2897_s1  ;;  %1466 = vst [vmem:[%s690_s6] sm:$0xff] %v1461_v44  ;;  %s2716_s1 = scalar_lea.vmem %s2715_s2, 256 }
 0x676   : > { %v1463_v13 = vpop.f32.mrf.mxu1  ;;  %p2718_p4 = scmp.lt.s32.totalorder %s2716_s1, %s2710_s18 }
 0x678   : > { %v2258_v12 = vpop.f32.mrf.mxu1  ;;  %p2719_p12 = por %p2718_p4, %p2717_p1 }
 0x679   : > { %1477 = vrot.lane.b32.xlu0 %v1461_v44, %s2898_s8 }
 0x67a   : > { %p2720_p8 = pnand %p2719_p12, %p2713_p11 }
 0x6e7   : > { %v1469_v14 = vpop.permute.xlu0 %1468 }
 0x6e8   : > { %vm1471_vm6 = vcmp.gt.f32.partialorder %v1461_v44, %v1469_v14 }
 0x6e9   : > { %v1472_v15 = vsel %vm1471_vm6, 1, %v2896_v38 }
 0x6ea   : > { %1473 = vrot.lane.b32.xlu1 %v1472_v15, %s2898_s8 }
 0x6eb   : > { %v1478_v50 = vpop.permute.xlu0 %1477 }
 0x75c   : > { %v1474_v9 = vpop.permute.xlu1 %1473 }
 0x75d   : > { %vm1475_vm9 = vcmp.ne.s32.totalorder %v1474_v9, 0 }
 0x75e   : > { %vm1476_vm10 = vmand %vm1026_vm8, %vm1475_vm9 }
 0x75f   : > { %v1480_v4 = vsel %vm1476_vm10, %v1478_v50, -10000.0 }
 0x760   : > { %v1482_v51 = vsel %vm1481_vm7, %v1480_v4, -inf }
 0x761   : > { %v1483_v52 = vrot.slane %v1482_v51, 4 }
 0x763   : > { %v1484_v53 = vmax.f32 %v1482_v51, %v1483_v52 }
 0x765   : > { %v1485_v54 = vrot.slane %v1484_v53, 2 }
 0x767   : > { %v1486_v55 = vmax.f32 %v1484_v53, %v1485_v54 }
 0x769   : > { %v1487_v56 = vrot.slane %v1486_v55, 1 }
 0x76b   : > { %v1488_v57 = vmax.f32 %v1486_v55, %v1487_v56 }
 0x76d   : > { %v1489_v58 = vsub.f32 %v1480_v4, %v1488_v57 }
 0x76f   : > { %v1490_v59 = vmul.f32 1.442695, %v1489_v58 }
 0x771   : > { %2518 = vpow2.f32 %v1490_v59 }
 0x77e   : > { %v2519_v60 = vpop.eup %2518 }
 0x77f   : > { %v1492_v61 = vsel %vm1481_vm7, %v2519_v60, 0.0 }
 0x780   : > { %v1493_v62 = vrot.slane %v1492_v61, 4 }
 0x782   : > { %v1494_v63 = vadd.f32 %v1493_v62, %v1492_v61 }
 0x784   : > { %v1495_v0 = vrot.slane %v1494_v63, 2 }
 0x786   : > { %v1496_v31 = vadd.f32 %v1495_v0, %v1494_v63 }
 0x788   : > { %v1497_v1 = vrot.slane %v1496_v31, 1 }
 0x78a   : > { %v1498_v2 = vadd.f32 %v1497_v1, %v1496_v31 }
 0x78c   : > { %2520 = vrcp.f32 %v1498_v2 }
 0x799   : > { %v2521_v5 = vpop.eup %2520 }
 0x79a   : > { %v1500_v6 = vmul.f32 %v2521_v5, %v2519_v60 }
 0x79c   : > { %1503 = vperm.xlu1 %2430, %v1500_v6  }
 0x817   : > { %v1504_v19 = vpop.permute.xlu1 %1503 }
 0x818   : > { %v1506_v35 = vmul.f32 %v1504_v19, %v3391_v21  ;;  %v2477_v21 = vld [vmem:[#allocation14 + $0x10] sm:$0xff]  }
 0x819   : > { %2290 = vmatpush3.bf16.msra.mxu1 %v2477_v21 }
 0x81a   : > { %v1507_v20 = vrot.slane %v1506_v35, 4  ;;  %2291 = vmatprep.subr.bf16.mxu1 %v2887_v46 }
 0x81c   : > { %v1508_v22 = vadd.f32 %v1507_v20, %v1506_v35 }
 0x81d   : > { %2292 = vmatpush3.bf16.msra.mxu1 %v2478_v30 }
 0x81e   : > { %v1509_v23 = vrot.slane %v1508_v22, 2  ;;  %2293 = vmatprep.subr.bf16.mxu1 %v2887_v46 }
 0x820   : > { %v1510_v24 = vadd.f32 %v1509_v23, %v1508_v22 }
 0x821   : > { %2294 = vmatpush3.bf16.msra.mxu1 %v2479_v33 }
 0x822   : > { %v1511_v25 = vrot.slane %v1510_v24, 1 }
 0x824   : > { %v1512_v26 = vadd.f32 %v1511_v25, %v1510_v24 }
 0x826   : > { %v1514_v27 = vpack.c.bf16 %v1512_v26, %v1512_v26  ;;  %1513 = vst [vmem:[%s696_s21] sm:$0x1] %v1512_v26 }
 0x828   : > { %2276 = vmatmul.mubr.bf16.vlgmr.msra.gmra.mxu0 %v1514_v27 }
 0x8e8   : > { %v1614_v36 = vpop.f32.mrf.mxu0 }
 0x8e9   : > { %v1615_v37 = vadd.f32 %v1614_v36, %v1531_v34 }
 0x8ea   : > { %v2277_v39 = vpop.f32.mrf.mxu0 }
 0x8eb   : > { %2522 = vtanh.f32 %v1615_v37 }
 0x8ec   : > { %v1617_v32 = vpop.f32.mrf.mxu0 }
 0x8ee   : > { %v2278_v41 = vpop.f32.mrf.mxu0 }
 0x8f8   : > { %v2523_v42 = vpop.eup %2522 }
 0x8f9   : > { %v1621_v38 = vpack.c.bf16 %v2523_v42, %v2523_v42 }
 0x8fb   : > { %2296 = vmatmul.mubr.bf16.vlgmr.msra.gmra.mxu1 %v1621_v38 }
 0x8fc   : > { %2723 = shalt.err (!%p2720_p8)
}
 0x8fd   : > { %s2724_s6 = scalar_lea.hbm %s1766_s25, 128  ;;  %s2728_s28 = scalar_lea.hbm %s3583_s15, 256 }
 0x8fe   : > { %p2725_p3 = scmp.ne.s32.totalorder %s1766_s25, %s2724_s6  ;;  %p2729_p2 = scmp.lt.s32.totalorder %s1766_s25, %s3583_s15 }
 0x8ff   : > { %p2730_p10 = scmp.lt.s32.totalorder %s2728_s28, %s2724_s6 }
 0x900   : > { %p2726_p7 = pnand %p2725_p3, %p3644_p5 }
 0x901   : > { %p2731_p0 = por %p2730_p10, %p2729_p2 }
 0x902   : > { %p2727_p6 = pneg %p2726_p7 }
 0x904   : > { %p2732_p13 = pnand %p2731_p0, %p2727_p6 }
 0x906   : > { %2735 = shalt.err (!%p2732_p13)
}
 0x907   : > { %2324 = dma.vmem_to_hbm [thread:$0]  (%p3644_p5), %s1769_s26, 128, %s1766_s25, %s3452_s22  }
 0x908   : > { %s3472_s5 = scalar_lea.hbm %s3582_s14, %s2099_s23  ;;  %s1755_s2 = sshll.u32 %s683_s12, 4  ;;  %s1756_s2 = int_to_ptr.vmem [resolvable:$true] %s1755_s2 }
 0x909   : > { %s2101_s1 = sshll.u32 %s3017_s30, 4  ;;  %s1729_s6 = scalar_lea.sflag [#allocation5], %s3215_s16 }
 0x90a   : > { %s2736_s10 = scalar_lea.vmem %s1756_s2, 128  ;;  %s2900_s8 = smov [#allocation15]  }
 0x90b   : > { %p2737_p9 = scmp.ne.s32.totalorder %s1756_s2, %s2736_s10  ;;  %s2740_s28 = sshll.u32 %s2900_s8, 4  ;;  %s2741_s28 = int_to_ptr.vmem [resolvable:$false] %s2740_s28 }
 0x90c   : > { %s2742_s26 = scalar_lea.vmem %s2741_s28, 256  ;;  %p2743_p4 = scmp.lt.s32.totalorder %s1756_s2, %s2741_s28 }
 0x90d   : > { %p2738_p11 = pnand %p2737_p9, %p3644_p5  ;;  %p2744_p12 = scmp.lt.s32.totalorder %s2742_s26, %s2736_s10 }
 0x90f   : > { %p2739_p1 = pneg %p2738_p11  ;;  %p2745_p8 = por %p2744_p12, %p2743_p4 }
 0x911   : > { %p2746_p3 = pnand %p2745_p8, %p2739_p1 }
 0x913   : > { %2749 = shalt.err (!%p2746_p3)
}
 0x914   : > { %s2750_s13 = scalar_lea.hbm %s3472_s5, 128  ;;  %s2754_s25 = scalar_lea.hbm %s3582_s14, 256 }
 0x915   : > { %p2751_p7 = scmp.ne.s32.totalorder %s3472_s5, %s2750_s13  ;;  %p2755_p10 = scmp.lt.s32.totalorder %s3472_s5, %s3582_s14 }
 0x916   : > { %p2756_p0 = scmp.lt.s32.totalorder %s2754_s25, %s2750_s13 }
 0x917   : > { %p2752_p6 = pnand %p2751_p7, %p3644_p5 }
 0x918   : > { %p2757_p13 = por %p2756_p0, %p2755_p10 }
 0x919   : > { %p2753_p2 = pneg %p2752_p6 }
 0x91b   : > { %p2758_p9 = pnand %p2757_p13, %p2753_p2 }
 0x91d   : > { %2761 = shalt.err (!%p2758_p9)
}
 0x91e   : > { %2323 = dma.vmem_to_hbm [thread:$0]  (%p3644_p5), %s1756_s2, 128, %s3472_s5, %s1729_s6  }
 0x91f   : > { %s3645_s10 = sld [smem:[#allocation42_spill]]  ;;  %s1781_s28 = sshll.u32 %s696_s21, 4  ;;  %s1782_s28 = int_to_ptr.vmem [resolvable:$true] %s1781_s28 }
 0x920   : > { %s2762_s26 = scalar_lea.vmem %s1782_s28, 16  ;;  %s2901_s13 = smov [#allocation18]  }
 0x921   : > { %p2763_p11 = scmp.ne.s32.totalorder %s1782_s28, %s2762_s26  ;;  %s2766_s12 = sshll.u32 %s2901_s13, 4  ;;  %s2767_s12 = int_to_ptr.vmem [resolvable:$false] %s2766_s12 }
 0x922   : > { %s2768_s23 = scalar_lea.vmem %s2767_s12, 32  ;;  %p2769_p12 = scmp.lt.s32.totalorder %s1782_s28, %s2767_s12 }
 0x923   : > { %p2764_p1 = pnand %p2763_p11, %p3644_p5  ;;  %p2770_p8 = scmp.lt.s32.totalorder %s2768_s23, %s2762_s26 }
 0x925   : > { %s1779_s8 = scalar_lea.hbm %s3645_s10, %s2101_s1  ;;  %p2765_p4 = pneg %p2764_p1 }
 0x926   : > { %p2771_p3 = por %p2770_p8, %p2769_p12 }
 0x928   : > { %p2772_p7 = pnand %p2771_p3, %p2765_p4 }
 0x92a   : > { %2775 = shalt.err (!%p2772_p7)
}
 0x92b   : > { %s2776_s5 = scalar_lea.hbm %s1779_s8, 16  ;;  %s2780_s6 = scalar_lea.hbm %s3645_s10, 32 }
 0x92c   : > { %p2777_p6 = scmp.ne.s32.totalorder %s1779_s8, %s2776_s5  ;;  %p2781_p0 = scmp.lt.s32.totalorder %s1779_s8, %s3645_s10 }
 0x92d   : > { %p2782_p13 = scmp.lt.s32.totalorder %s2780_s6, %s2776_s5 }
 0x92e   : > { %p2778_p2 = pnand %p2777_p6, %p3644_p5 }
 0x92f   : > { %p2783_p9 = por %p2782_p13, %p2781_p0 }
 0x930   : > { %p2779_p10 = pneg %p2778_p2 }
 0x932   : > { %p2784_p11 = pnand %p2783_p9, %p2779_p10 }
 0x934   : > { %2787 = shalt.err (!%p2784_p11)
}
 0x935   : > { %2325 = dma.vmem_to_hbm [thread:$0]  (%p3644_p5), %s1782_s28, 16, %s1779_s8, %s3452_s22  }
 0x936   : > { %s3646_s18 = sld [smem:[#allocation41_spill]]  ;;  %s702_s26 = scalar_lea.vmem [#allocation19], %s3215_s16 }
 0x937   : > { %s1794_s13 = sshll.u32 %s702_s26, 4  ;;  %s3647_s5 = sld [smem:[#allocation43_spill]]  ;;  %s3525_s13 = int_to_ptr.vmem [resolvable:$true] %s1794_s13 }
 0x938   : > { %s1743_s22 = scalar_lea.sflag [#allocation20], %s3215_s16  ;;  %s2788_s8 = scalar_lea.vmem %s3525_s13, 16 }
 0x939   : > { %p2789_p1 = scmp.ne.s32.totalorder %s3525_s13, %s2788_s8  ;;  %s2902_s30 = smov [#allocation19]  }
 0x93a   : > { %s2792_s28 = sshll.u32 %s2902_s30, 4  ;;  %s2793_s28 = int_to_ptr.vmem [resolvable:$false] %s2792_s28 }
 0x93b   : > { %p2790_p4 = pnand %p2789_p1, %p3644_p5  ;;  %s2794_s2 = scalar_lea.vmem %s2793_s28, 32 }
 0x93c   : > { %v1638_v46 = vld [vmem:[%s3646_s18] sm:$0x1]  ;;  %p2795_p8 = scmp.lt.s32.totalorder %s3525_s13, %s2793_s28  ;;  %p2796_p3 = scmp.lt.s32.totalorder %s2794_s2, %s2788_s8 }
 0x93d   : > { %s3523_s21 = scalar_lea.hbm %s3647_s5, %s2101_s1  ;;  %p2791_p12 = pneg %p2790_p4 }
 0x93e   : > { %p2797_p7 = por %p2796_p3, %p2795_p8 }
 0x940   : > { %p2798_p6 = pnand %p2797_p7, %p2791_p12 }
 0x9bb   : > { %v1721_v43 = vpop.f32.mrf.mxu1 }
 0x9bc   : > { %v1722_v45 = vadd.f32 %v1721_v43, %v1638_v46 }
 0x9bd   : > { %v2297_v44 = vpop.f32.mrf.mxu1 }
 0x9be   : > { %1727 = vst [vmem:[%s702_s26] sm:$0x1] %v1722_v45 }
 0x9bf   : > { %v1724_v47 = vpop.f32.mrf.mxu1 }
 0x9c0   : > { %2801 = shalt.err (!%p2798_p6)
}
 0x9c1   : > { %s2802_s1 = scalar_lea.hbm %s3523_s21, 16  ;;  %s2806_s25 = scalar_lea.hbm %s3647_s5, 32 }
 0x9c2   : > { %p2803_p2 = scmp.ne.s32.totalorder %s3523_s21, %s2802_s1  ;;  %p2807_p13 = scmp.lt.s32.totalorder %s3523_s21, %s3647_s5 }
 0x9c3   : > { %p2808_p9 = scmp.lt.s32.totalorder %s2806_s25, %s2802_s1 }
 0x9c4   : > { %p2804_p10 = pnand %p2803_p2, %p3644_p5 }
 0x9c5   : > { %p2809_p11 = por %p2808_p9, %p2807_p13 }
 0x9c6   : > { %p2805_p0 = pneg %p2804_p10 }
 0x9c8   : > { %p2810_p1 = pnand %p2809_p11, %p2805_p0 }
 0x9ca   : > { %2813 = shalt.err (!%p2810_p1)
}
 0x9cb   : > { %2326 = dma.vmem_to_hbm [thread:$0]  (%p3644_p5), %s3525_s13, 16, %s3523_s21, %s1743_s22   ;;  %v2298_v13 = vpop.f32.mrf.mxu1 }
 0x9cc PF: > { %s3648_s0 = sld [smem:[#allocation29_spill]]  ;;  %p3651_p12 = scmp.ge.s32.totalorder %s2876_s29, 2 }
 0x9cd   : > { %s3649_s18 = sld [smem:[#allocation33_spill]] }
 0x9d2   : > { %s1806_s26 = sand.u32 1, %s3648_s0  }
 0x9d3   : > { %p3650_p4 = scmp.ne.s32.totalorder %s3649_s18, 0  ;;  %s1807_s12 = scalar_lea.sflag [#allocation5], %s1806_s26 }
 0x9d5   : > { %p2355_p8 = pnand %p3651_p12, %p3650_p4 }
 0x9d7   : > { %p2356_p3 = pneg %p2355_p8 }
 0x9d9   : > { %2851 = dma.done.wait (%p2356_p3), %s1807_s12, 128  }
 0x9da   : > { %2853 = vsyncadd (%p2356_p3), %s1807_s12, 4294967168  ;;  %s3652_s23 = sadd.s32 4294967294, %s2876_s29  }
 0x9db   : > { %s1815_s8 = sand.u32 1, %s3652_s23  }
 0x9dc   : > { %s1816_s17 = scalar_lea.sflag [#allocation17], %s1815_s8 }
 0x9dd   : > { %2855 = dma.done.wait (%p2356_p3), %s1816_s17, 144  }
 0x9de   : > { %2857 = vsyncadd (%p2356_p3), %s1816_s17, 4294967152  ;;  %s1833_s13 = scalar_lea.sflag [#allocation20], %s1806_s26 }
 0x9df   : > { %2859 = dma.done.wait (%p2356_p3), %s1833_s13, 16  }
 0x9e0   : > { %2861 = vsyncadd (%p2356_p3), %s1833_s13, 4294967280  ;;  %s3653_s29 = sld [smem:[#allocation31_spill]]  ;;  %s3656_s26 = smov %s2868_s27 }
 0x9e1   : > { %s3654_s21 = sld [smem:[#allocation30_spill]] }
 0x9e2   : > { %s3655_s28 = sld [smem:[#allocation32_spill]] }
 0x9e6   : > { %p43_p5 = scmp.ge.s32.totalorder %s3653_s29, 4  }
 0x9e7   : > { %s3657_s27 = smov %s3654_s21 }
 0x9e8   :  { %45 = sbr.rel (!%p43_p5) target bundleno = 25 (0x19), region = 203 }
 0x9ed   :  { %1837 = vsyncpa [#allocation4], 1 }
 0x9ee   :  { %1839 = vsyncpa [#allocation4 + $0x1], 1 }
 0x9ef   :  { %1840 = vsyncpa [#allocation7], 1 }
 0x9f0   :  { %1842 = vsyncpa [#allocation7 + $0x1], 1 }
 0x9f1   :  { %1843 = vsyncpa [#allocation10], 1 }
 0x9f2   :  { %1844 = vsyncpa [#allocation13], 1 }
 0x9f3   :  { %1845 = vsyncpa [#allocation5], 1 }
 0x9f4   :  { %1847 = vsyncpa [#allocation5 + $0x1], 1 }
 0x9f5   :  { %1848 = vsyncpa [#allocation17], 1 }
 0x9f6   :  { %1850 = vsyncpa [#allocation17 + $0x1], 1 }
 0x9f7   :  { %1851 = vsyncpa [#allocation20], 1 }
 0x9f8   :  { %1853 = vsyncpa [#allocation20 + $0x1], 1 }

</bundles_post_ra>
